<compile_context>
chip_gen: v5e
topology: v5e:2x2
jax: 0.10.0
libtpu: 0.0.40
codegen_flags: <defaults>
</compile_context>

<pallas_src>
import functools

import jax
import jax.numpy as jnp
import numpy as np
from jax.experimental import pallas as pl
from jax.experimental.pallas import tpu as pltpu

BN_EPS = 1e-5


# -----------------------------------------------------------------------------------------
# Kernel 1: conv1 -> conv2 -> conv3 (bias hoisted) -> running max over point tiles.
# -----------------------------------------------------------------------------------------
def conv_max_kernel(x_ref, w1t_ref, s1_ref, w2t_ref, s2_ref, w3_ref, g_ref,
                    *, n_points, tile_n):
    n_idx = pl.program_id(1)

    # x block: (1, K, tile_n) -> (K, tile_n); points are lane-dense.
    x = x_ref[0]

    # conv1 (transposed): (64, K) @ (K, tile_n) -> (64, tile_n); BN folded; relu.
    h1t = jnp.dot(w1t_ref[...], x, preferred_element_type=jnp.float32)
    h1t = jnp.maximum(h1t + s1_ref[...], 0.0)                          # (64, tile_n)

    # conv2 (transposed): (128, 64) @ (64, tile_n) -> (128, tile_n); BN folded; relu.
    h2t = jnp.dot(w2t_ref[...], h1t.astype(jnp.bfloat16),
                  preferred_element_type=jnp.float32)
    h2t = jnp.maximum(h2t + s2_ref[...], 0.0)                          # (128, tile_n)

    # Single aligned f32 transpose: points -> sublanes, channels -> lanes.
    h2 = jnp.transpose(h2t)                                            # (tile_n, 128)

    # conv3 (bias hoisted past the max; applied in the FC kernel).
    h3 = jnp.dot(h2.astype(jnp.bfloat16), w3_ref[...],
                 preferred_element_type=jnp.float32)                   # (tile_n, 1024)

    if n_points % tile_n:  # static: only traced when the last tile is ragged
        pt = n_idx * tile_n + jax.lax.broadcasted_iota(jnp.int32, (tile_n, 1), 0)
        h3 = jnp.where(pt < n_points, h3, -jnp.inf)

    tile_max = jnp.max(h3, axis=0, keepdims=True)                      # (1, 1024), sublane-reduce

    # Running max in the (resident) output block: write directly on the first point tile,
    # combine afterwards (avoids an extra -inf init write + read on iteration 0).
    @pl.when(n_idx == 0)
    def _():
        g_ref[0] = tile_max

    @pl.when(n_idx > 0)
    def _():
        g_ref[0] = jnp.maximum(g_ref[0], tile_max)


# -----------------------------------------------------------------------------------------
# Kernel 2: FC stack batched over B (+ hoisted conv3 bias, + eye(k) folded into final bias).
# -----------------------------------------------------------------------------------------
def fc_kernel(g_ref, b3_ref, w4_ref, s4_ref, w5_ref, s5_ref, w6_ref, b6_ref, out_ref):
    g = g_ref[...] + b3_ref[...]                                       # (B, 1024)

    f = jnp.dot(g.astype(jnp.bfloat16), w4_ref[...],
                preferred_element_type=jnp.float32)
    f = jnp.maximum(f + s4_ref[...], 0.0)                              # (B, 512)

    f = jnp.dot(f.astype(jnp.bfloat16), w5_ref[...],
                preferred_element_type=jnp.float32)
    f = jnp.maximum(f + s5_ref[...], 0.0)                              # (B, 256)

    out_ref[...] = jnp.dot(f, w6_ref[...],
                           preferred_element_type=jnp.float32) + b6_ref[...]   # (B, k*k)


# -----------------------------------------------------------------------------------------
# Parameter construction / offline folding.
# -----------------------------------------------------------------------------------------
def init_raw_params(key, k=3):
    """Deterministic synthetic parameters mirroring the PyTorch module (inference mode)."""
    layers = [(k, 64, True), (64, 128, True), (128, 1024, False),
              (1024, 512, True), (512, 256, True), (256, k * k, False)]
    raw = []
    for (cin, cout, norm) in layers:
        key, kw, kb, kg, kbe = jax.random.split(key, 5)
        w = jax.random.normal(kw, (cin, cout), jnp.float32) / jnp.sqrt(jnp.float32(cin))
        b = 0.1 * jax.random.normal(kb, (cout,), jnp.float32)
        if norm:
            gamma = 1.0 + 0.1 * jax.random.normal(kg, (cout,), jnp.float32)
            beta = 0.1 * jax.random.normal(kbe, (cout,), jnp.float32)
            rmean = jnp.zeros((cout,), jnp.float32)
            rvar = jnp.ones((cout,), jnp.float32)
            raw.append((w, b, gamma, beta, rmean, rvar))
        else:
            raw.append((w, b, None, None, None, None))
    return raw


def fold_layer(w, b, gamma, beta, rmean, rvar):
    """Fold inference BatchNorm into (weight, shift).  Exact for running stats."""
    if gamma is None:
        return w, b
    scale = gamma / jnp.sqrt(rvar + BN_EPS)
    return w * scale[None, :], b * scale + (beta - rmean * scale)


def prep_params(raw, k=3):
    """Kernel operands: folded BN, bf16 big weights, hoisted conv3 bias, eye(k) in last bias."""
    w1, s1 = fold_layer(*raw[0])
    w2, s2 = fold_layer(*raw[1])
    w3, b3 = fold_layer(*raw[2])
    w4, s4 = fold_layer(*raw[3])
    w5, s5 = fold_layer(*raw[4])
    w6, b6 = fold_layer(*raw[5])
    ident = jnp.eye(k, dtype=jnp.float32).reshape(k * k)
    conv_params = dict(
        w1t=jnp.transpose(w1),                         # (64, k)    f32
        s1=s1.reshape(-1, 1),                          # (64, 1)    f32
        w2t=jnp.transpose(w2).astype(jnp.bfloat16),    # (128, 64)  bf16
        s2=s2.reshape(-1, 1),                          # (128, 1)   f32
        w3=w3.astype(jnp.bfloat16),                    # (128,1024) bf16
    )
    fc_params = dict(
        b3=b3.reshape(1, -1),                          # (1, 1024)  hoisted conv3 bias
        w4=w4.astype(jnp.bfloat16),                    # (1024,512) bf16
        s4=s4.reshape(1, -1),                          # (1, 512)
        w5=w5.astype(jnp.bfloat16),                    # (512,256)  bf16
        s5=s5.reshape(1, -1),                          # (1, 256)
        w6=w6,                                         # (256,k*k)  f32
        b6=(b6 + ident).reshape(1, -1),                # (1, k*k)   bias + flattened eye(k)
    )
    return conv_params, fc_params


# -----------------------------------------------------------------------------------------
# Forward wrapper.
# -----------------------------------------------------------------------------------------
def transformation_forward(x_bkn, conv_params, fc_params, k=3, tile_n=512):
    """x_bkn: (B, K, N) float32 (PyTorch NCW layout).  Returns (B, k, k) float32."""
    B, K, N = x_bkn.shape
    assert K == k

    tile_n = min(tile_n, N)
    if tile_n < N and tile_n % 128 != 0:
        raise ValueError("tile_n must be a multiple of 128 (or >= N)")
    n_tiles = pl.cdiv(N, tile_n)

    cp = conv_params
    kernel1 = functools.partial(conv_max_kernel, n_points=N, tile_n=tile_n)

    def const_spec(p):
        return pl.BlockSpec(p.shape, lambda b, n: (0,) * p.ndim)

    g = pl.pallas_call(
        kernel1,
        out_shape=jax.ShapeDtypeStruct((B, 1, 1024), jnp.float32),
        grid=(B, n_tiles),
        in_specs=[
            pl.BlockSpec((1, K, tile_n), lambda b, n: (b, 0, n)),
            const_spec(cp["w1t"]), const_spec(cp["s1"]),
            const_spec(cp["w2t"]), const_spec(cp["s2"]),
            const_spec(cp["w3"]),
        ],
        out_specs=pl.BlockSpec((1, 1, 1024), lambda b, n: (b, 0, 0)),
        compiler_params=pltpu.CompilerParams(
            dimension_semantics=("parallel", "arbitrary")),
    )(x_bkn, cp["w1t"], cp["s1"], cp["w2t"], cp["s2"], cp["w3"])

    g = g.reshape(B, 1024)

    fp = fc_params
    out = pl.pallas_call(
        fc_kernel,
        out_shape=jax.ShapeDtypeStruct((B, k * k), jnp.float32),
    )(g, fp["b3"], fp["w4"], fp["s4"], fp["w5"], fp["s5"], fp["w6"], fp["b6"])

    return out.reshape(B, k, k)


# -----------------------------------------------------------------------------------------
# Pure-JAX reference implementing the identical numerical recipe (folded BN, bf16 weights).
# -----------------------------------------------------------------------------------------
def transformation_reference(x_bkn, conv_params, fc_params, k=3):
    hi = jax.lax.Precision.HIGHEST
    cp, fp = conv_params, fc_params
    x = jnp.transpose(x_bkn, (0, 2, 1))                                # (B, N, K)
    w1 = jnp.transpose(cp["w1t"])                                      # (K, 64) f32
    h1 = jnp.maximum(jnp.dot(x, w1, precision=hi) + cp["s1"].reshape(1, 1, -1), 0.0)
    w2 = jnp.transpose(cp["w2t"])                                      # (64, 128) bf16
    h2 = jnp.maximum(
        jnp.dot(h1.astype(jnp.bfloat16), w2, preferred_element_type=jnp.float32)
        + cp["s2"].reshape(1, 1, -1), 0.0)
    h3 = jnp.dot(h2.astype(jnp.bfloat16), cp["w3"], preferred_element_type=jnp.float32)
    g = jnp.max(h3, axis=1) + fp["b3"]                                 # (B, 1024)
    f = jnp.maximum(
        jnp.dot(g.astype(jnp.bfloat16), fp["w4"], preferred_element_type=jnp.float32)
        + fp["s4"], 0.0)
    f = jnp.maximum(
        jnp.dot(f.astype(jnp.bfloat16), fp["w5"], preferred_element_type=jnp.float32)
        + fp["s5"], 0.0)
    out = jnp.dot(f, fp["w6"], precision=hi) + fp["b6"]                # bias already has eye(k)
    return out.reshape(-1, k, k)


if __name__ == "__main__":
    k = 3
    B, N = 2, 256                           # small: 2 clouds, 256 points -> 2 point-tiles
    key = jax.random.PRNGKey(0)
    key, kx = jax.random.split(key)
    x = jax.random.normal(kx, (B, k, N), jnp.float32)   # PyTorch layout (B, K, N)

    raw = init_raw_params(jax.random.PRNGKey(0), k=k)
    conv_params, fc_params = prep_params(raw, k=k)

    out = transformation_forward(x, conv_params, fc_params, k=k, tile_n=128)
    out = jax.block_until_ready(out)

    ref = jax.block_until_ready(transformation_reference(x, conv_params, fc_params, k=k))
    np.testing.assert_allclose(np.asarray(out), np.asarray(ref), rtol=5e-3, atol=5e-3)
    assert out.shape == (B, k, k)

    # TODO(synk): BatchNorm is applied in inference form (folded running stats); PyTorch
    # training-mode batch statistics are not modeled.
    print("KERNEL_OK")
</pallas_src>

<mosaic_0001>
module attributes {stable_mosaic.version = 11 : i64} {
  func.func @conv_max_kernel(%arg0: i32, %arg1: i32, %arg2: memref<1x3x128xf32, #tpu.memory_space<vmem>>, %arg3: memref<64x3xf32, #tpu.memory_space<vmem>>, %arg4: memref<64x1xf32, #tpu.memory_space<vmem>>, %arg5: memref<128x64xbf16, #tpu.memory_space<vmem>>, %arg6: memref<128x1xf32, #tpu.memory_space<vmem>>, %arg7: memref<128x1024xbf16, #tpu.memory_space<vmem>>, %arg8: memref<1x1x1024xf32, #tpu.memory_space<vmem>>) attributes {dimension_semantics = [#tpu.dimension_semantics<parallel>, #tpu.dimension_semantics<arbitrary>], iteration_bounds = array<i64: 2, 2>, scalar_prefetch = 0 : i64, scratch_operands = 0 : i64, tpu.core_type = #tpu.core_type<tc>, window_params = [{transform_indices = @transform_0, window_bounds = array<i64: 1, 3, 128>}, {pipeline_mode = #tpu.pipeline_mode<synchronous>, transform_indices = @transform_1, window_bounds = array<i64: 64, 3>}, {pipeline_mode = #tpu.pipeline_mode<synchronous>, transform_indices = @transform_2, window_bounds = array<i64: 64, 1>}, {pipeline_mode = #tpu.pipeline_mode<synchronous>, transform_indices = @transform_3, window_bounds = array<i64: 128, 64>}, {pipeline_mode = #tpu.pipeline_mode<synchronous>, transform_indices = @transform_4, window_bounds = array<i64: 128, 1>}, {pipeline_mode = #tpu.pipeline_mode<synchronous>, transform_indices = @transform_5, window_bounds = array<i64: 128, 1024>}, {transform_indices = @transform_6, window_bounds = array<i64: 1, 1, 1024>}]} {
    %c0 = arith.constant 0 : index
    %c0_0 = arith.constant 0 : index
    %c0_1 = arith.constant 0 : index
    %0 = vector.load %arg2[%c0, %c0_0, %c0_1] : memref<1x3x128xf32, #tpu.memory_space<vmem>>, vector<1x3x128xf32>
    %1 = vector.shape_cast %0 : vector<1x3x128xf32> to vector<3x128xf32>
    %c0_2 = arith.constant 0 : index
    %c0_3 = arith.constant 0 : index
    %2 = vector.load %arg3[%c0_2, %c0_3] : memref<64x3xf32, #tpu.memory_space<vmem>>, vector<64x3xf32>
    %cst = arith.constant dense<0.000000e+00> : vector<64x128xf32>
    %3 = tpu.matmul %2, %1, %cst {dimension_numbers = #tpu.dot_dimension_numbers<[1], [0], [0], [1], [0, 0, 1, 1], [], []>} : vector<64x3xf32>, vector<3x128xf32>, vector<64x128xf32> -> vector<64x128xf32>
    %c0_4 = arith.constant 0 : index
    %c0_5 = arith.constant 0 : index
    %4 = vector.load %arg4[%c0_4, %c0_5] : memref<64x1xf32, #tpu.memory_space<vmem>>, vector<64x1xf32>
    %5 = vector.broadcast %4 : vector<64x1xf32> to vector<64x128xf32>
    %6 = arith.addf %3, %5 : vector<64x128xf32>
    %cst_6 = arith.constant 0.000000e+00 : f32
    %7 = vector.broadcast %cst_6 : f32 to vector<64x128xf32>
    %8 = arith.maximumf %6, %7 : vector<64x128xf32>
    %c0_7 = arith.constant 0 : index
    %c0_8 = arith.constant 0 : index
    %9 = vector.load %arg5[%c0_7, %c0_8] : memref<128x64xbf16, #tpu.memory_space<vmem>>, vector<128x64xbf16>
    %10 = arith.truncf %8 : vector<64x128xf32> to vector<64x128xbf16>
    %cst_9 = arith.constant dense<0.000000e+00> : vector<128x128xf32>
    %11 = tpu.matmul %9, %10, %cst_9 {dimension_numbers = #tpu.dot_dimension_numbers<[1], [0], [0], [1], [0, 0, 1, 1], [], []>} : vector<128x64xbf16>, vector<64x128xbf16>, vector<128x128xf32> -> vector<128x128xf32>
    %c0_10 = arith.constant 0 : index
    %c0_11 = arith.constant 0 : index
    %12 = vector.load %arg6[%c0_10, %c0_11] : memref<128x1xf32, #tpu.memory_space<vmem>>, vector<128x1xf32>
    %13 = vector.broadcast %12 : vector<128x1xf32> to vector<128x128xf32>
    %14 = arith.addf %11, %13 : vector<128x128xf32>
    %cst_12 = arith.constant 0.000000e+00 : f32
    %15 = vector.broadcast %cst_12 : f32 to vector<128x128xf32>
    %16 = arith.maximumf %14, %15 : vector<128x128xf32>
    %17 = tpu.transpose %16, [1, 0] : vector<128x128xf32> -> vector<128x128xf32>
    %18 = arith.truncf %17 : vector<128x128xf32> to vector<128x128xbf16>
    %c0_13 = arith.constant 0 : index
    %c0_14 = arith.constant 0 : index
    %19 = vector.load %arg7[%c0_13, %c0_14] : memref<128x1024xbf16, #tpu.memory_space<vmem>>, vector<128x1024xbf16>
    %cst_15 = arith.constant dense<0.000000e+00> : vector<128x1024xf32>
    %20 = tpu.matmul %18, %19, %cst_15 {dimension_numbers = #tpu.dot_dimension_numbers<[1], [0], [0], [1], [0, 0, 1, 1], [], []>} : vector<128x128xbf16>, vector<128x1024xbf16>, vector<128x1024xf32> -> vector<128x1024xf32>
    %cst_16 = arith.constant dense<0xFF800000> : vector<1024xf32>
    %21 = vector.multi_reduction <maximumf>, %20, %cst_16 [0] : vector<128x1024xf32> to vector<1024xf32>
    %22 = vector.shape_cast %21 : vector<1024xf32> to vector<1x1024xf32>
    %c0_i32 = arith.constant 0 : i32
    %23 = arith.cmpi eq, %arg1, %c0_i32 : i32
    %24 = arith.extui %23 : i1 to i32
    %c0_i32_17 = arith.constant 0 : i32
    %25 = arith.cmpi ne, %24, %c0_i32_17 : i32
    scf.if %25 {
      %c0_20 = arith.constant 0 : index
      %c0_21 = arith.constant 0 : index
      %c0_22 = arith.constant 0 : index
      %29 = vector.load %arg8[%c0_20, %c0_21, %c0_22] : memref<1x1x1024xf32, #tpu.memory_space<vmem>>, vector<1x1x1024xf32>
      %30 = vector.shape_cast %29 : vector<1x1x1024xf32> to vector<1x1024xf32>
      %31 = vector.shape_cast %22 : vector<1x1024xf32> to vector<1x1x1024xf32>
      tpu.vector_store %arg8[%c0_20, %c0_21, %c0_22], %31 {strides = array<i32>} : memref<1x1x1024xf32, #tpu.memory_space<vmem>>, vector<1x1x1024xf32>,
    } else {
    }
    %c0_i32_18 = arith.constant 0 : i32
    %26 = arith.cmpi sgt, %arg1, %c0_i32_18 : i32
    %27 = arith.extui %26 : i1 to i32
    %c0_i32_19 = arith.constant 0 : i32
    %28 = arith.cmpi ne, %27, %c0_i32_19 : i32
    scf.if %28 {
      %c0_20 = arith.constant 0 : index
      %c0_21 = arith.constant 0 : index
      %c0_22 = arith.constant 0 : index
      %29 = vector.load %arg8[%c0_20, %c0_21, %c0_22] : memref<1x1x1024xf32, #tpu.memory_space<vmem>>, vector<1x1x1024xf32>
      %30 = vector.shape_cast %29 : vector<1x1x1024xf32> to vector<1x1024xf32>
      %31 = arith.maximumf %30, %22 : vector<1x1024xf32>
      %c0_23 = arith.constant 0 : index
      %c0_24 = arith.constant 0 : index
      %c0_25 = arith.constant 0 : index
      %32 = vector.load %arg8[%c0_23, %c0_24, %c0_25] : memref<1x1x1024xf32, #tpu.memory_space<vmem>>, vector<1x1x1024xf32>
      %33 = vector.shape_cast %32 : vector<1x1x1024xf32> to vector<1x1024xf32>
      %34 = vector.shape_cast %31 : vector<1x1024xf32> to vector<1x1x1024xf32>
      tpu.vector_store %arg8[%c0_23, %c0_24, %c0_25], %34 {strides = array<i32>} : memref<1x1x1024xf32, #tpu.memory_space<vmem>>, vector<1x1x1024xf32>,
    } else {
    }
    return
  }
  func.func @transform_0(%arg0: i32, %arg1: i32) -> (i32, i32, i32) {
    %c0_i32 = arith.constant 0 : i32
    %c0_i32_0 = arith.constant 0 : i32
    return %arg0, %c0_i32, %arg1 : i32, i32, i32
  }
  func.func @transform_1(%arg0: i32, %arg1: i32) -> (i32, i32) {
    %c0_i32 = arith.constant 0 : i32
    %c0_i32_0 = arith.constant 0 : i32
    %c0_i32_1 = arith.constant 0 : i32
    return %c0_i32, %c0_i32_0 : i32, i32
  }
  func.func @transform_2(%arg0: i32, %arg1: i32) -> (i32, i32) {
    %c0_i32 = arith.constant 0 : i32
    %c0_i32_0 = arith.constant 0 : i32
    %c0_i32_1 = arith.constant 0 : i32
    return %c0_i32, %c0_i32_0 : i32, i32
  }
  func.func @transform_3(%arg0: i32, %arg1: i32) -> (i32, i32) {
    %c0_i32 = arith.constant 0 : i32
    %c0_i32_0 = arith.constant 0 : i32
    %c0_i32_1 = arith.constant 0 : i32
    return %c0_i32, %c0_i32_0 : i32, i32
  }
  func.func @transform_4(%arg0: i32, %arg1: i32) -> (i32, i32) {
    %c0_i32 = arith.constant 0 : i32
    %c0_i32_0 = arith.constant 0 : i32
    %c0_i32_1 = arith.constant 0 : i32
    return %c0_i32, %c0_i32_0 : i32, i32
  }
  func.func @transform_5(%arg0: i32, %arg1: i32) -> (i32, i32) {
    %c0_i32 = arith.constant 0 : i32
    %c0_i32_0 = arith.constant 0 : i32
    %c0_i32_1 = arith.constant 0 : i32
    return %c0_i32, %c0_i32_0 : i32, i32
  }
  func.func @transform_6(%arg0: i32, %arg1: i32) -> (i32, i32, i32) {
    %c0_i32 = arith.constant 0 : i32
    %c0_i32_0 = arith.constant 0 : i32
    %c0_i32_1 = arith.constant 0 : i32
    return %arg0, %c0_i32, %c0_i32_0 : i32, i32, i32
  }
}

</mosaic_0001>

<bundles_post_ra>
// kernel: tpu_custom_call.1
= control target key start
LH: loop header
LB: loop body
LE: loop exit
PB: predicated region body
PF: predicated region fallthrough
CT: control target
= control target key end

     0   :  { %s2859_s0 = inlined_call_operand.vmem [shape: f32[2,3,256], index: 0, kind: input, shape index: {}]   ;;  %s2860_s1 = inlined_call_operand.vmem [shape: f32[64,3], index: 1, kind: input, shape index: {}]   ;;  %s2861_s2 = inlined_call_operand.vmem [shape: f32[64,1], index: 2, kind: input, shape index: {}]   ;;  %s2862_s3 = inlined_call_operand.vmem [shape: bf16[128,64], index: 3, kind: input, shape index: {}]   ;;  %s2863_s4 = inlined_call_operand.vmem [shape: f32[128,1], index: 4, kind: input, shape index: {}]   ;;  %s2864_s5 = inlined_call_operand.hbm [shape: bf16[128,1024], index: 5, kind: input, shape index: {}]   ;;  %s2865_s6 = inlined_call_operand.hbm [shape: f32[2,1,1024], index: 6, kind: output, shape index: {}]  }
   0x1   :  { %2869 = sst [smem:[#allocation11_spill]] %s2864_s5 }
   0x2   :  { %11 = vsyncpa [#allocation3], 0 }
   0x3   :  { %12 = vsyncpa [#allocation4], 0 }
   0x4   :  { %14 = vsyncpa [#allocation4 + $0x1], 0  ;;  %s2490_s21 = smov 0   ;;  %s2492_s22 = smov 0  }
   0x5   :  { %s2494_s23 = smov 0   ;;  %s2496_s24 = smov 0  }
   0x6   :  { %s2498_s25 = smov 0   ;;  %s2500_s26 = smov 0  }
   0x7   :  { %s2502_s27 = smov 0   ;;  %s2504_s28 = smov 0  }
   0x8 LB: > { %2870 = sst [smem:[#allocation8_spill]] %s2445_s27  ;;  %s1832_s29 = sadd.s32 4294967295, %s2449_s28   ;;  %s2449_s28 = sphi %s2504_s28, %s20_s28   ;;  %s2445_s27 = sphi %s2502_s27, %s2880_s27   ;;  %s2441_s26 = sphi %s2500_s26, %s2885_s26   ;;  %s2437_s25 = sphi %s2498_s25, %s2878_s25   ;;  %s2433_s24 = sphi %s2496_s24, %s2884_s24   ;;  %s2429_s23 = sphi %s2494_s23, %s2883_s23   ;;  %s2425_s22 = sphi %s2492_s22, %s2882_s22   ;;  %s2421_s21 = sphi %s2490_s21, %s2881_s21  }
   0x9   : > { %s1833_s30 = sadd.s32 4294967294, %s2449_s28   ;;  %s29_s7 = sadd.s32 1, %s2441_s26 }
   0xa   : > { %s32_s8 = sadd.s32 1, %s2445_s27  ;;  %p30_p0 = scmp.ge.s32.totalorder %s29_s7, 2 }
   0xb   : > { %s172_s9 = sadd.s32 1, %s2429_s23  ;;  %p182_p1 = scmp.ne.s32.totalorder %s2429_s23, %s2425_s22 }
   0xc   : > { %p183_p2 = scmp.eq.s32.totalorder %s1832_s29, 3  ;;  %s2887_s7 = smov (%p30_p0, %s29_s7), 0 }
   0xd   : > { %2871 = sst [smem:[#allocation9_spill]] %s2887_s7  ;;  %s2889_s8 = smov (!%p30_p0, %s32_s8), %s2445_s27 }
   0xe   : > { %p2540_p3 = por %p183_p2, %p182_p1  ;;  %p188_p4 = scmp.ne.s32.totalorder %s2425_s22, %s2421_s21 }
   0xf   : > { %p34_p5 = scmp.ge.s32.totalorder %s2889_s8, 2  ;;  %p189_p6 = scmp.eq.s32.totalorder %s1833_s30, 3 }
  0x10   : > { %p1834_p7 = scmp.ge.s32.totalorder %s2449_s28, 1  ;;  %p196_p8 = scmp.lt.s32.totalorder %s2449_s28, 5 }
  0x11   : > { %s2891_s8 = smov (%p34_p5, %s2889_s8), 0  ;;  %p2550_p9 = por %p189_p6, %p188_p4 }
  0x12   : > { %2873 = sst [smem:[#allocation10_spill]] %s2891_s8  ;;  %p2554_p10 = pnand %p1834_p7, %p196_p8 }
  0x13   : > { %s169_s13 = ssub.s32 %s2445_s27, %s2891_s8  ;;  %p2247_p13 = scmp.eq.s32.totalorder %s1832_s29, 0 }
  0x14   : > { %p170_p11 = scmp.eq.s32.totalorder %s169_s13, 0  ;;  %p2239_p12 = pneg %p2554_p10 }
  0x15   : > { %s2876_s5 = sld [smem:[#allocation11_spill]]  ;;  %s2451_s18 = smov [#allocation2]  }
  0x16   : > { %s2566_s17 = scalar_select %p170_p11, %s2429_s23, %s172_s9  }
  0x17   : > { %s221_s19 = sshll.u32 %s2451_s18, 4  ;;  %p2240_p0 = pnand %p2247_p13, %p2239_p12  ;;  %s222_s19 = int_to_ptr.vmem [resolvable:$true] %s221_s19 }
  0x18   : > { %s2452_s20 = smov 512   ;;  %s2453_s30 = smov 32  }
  0x19   : > { %248 = sbr.rel (%p2554_p10) target bundleno = 982 (0x3d6), region = 44 }
  0x1b   : > { %s219_s16 = sshll.u32 %s2876_s5, 4  ;;  %s220_s16 = int_to_ptr.hbm [resolvable:$true] %s219_s16 }
  0x1c   : > { %2242 = dma.hbm_to_vmem [thread:$0]  (!%p2240_p0), %s220_s16, 8192, %s222_s19, [#allocation3], %s2452_s20, %s2452_s20, %s2453_s30  }
  0x1e   : > { %2412 = dma.done.wait (%p2247_p13), [#allocation3], 8192  }
  0x1f   : > { %2414 = vsyncadd (%p2247_p13), [#allocation3], 4294959104  ;;  %s2866_s29 = sand.u32 1, %s2425_s22   ;;  %p282_p1 = scmp.lt.s32.totalorder %s2437_s25, 1  ;;  %v2454_v0 = vmov 0   ;;  %v306_v1 = vld [vmem:[%s2861_s2 + $0x30] sm:$0xff] }
  0x20   : > { %2318 = vset.pattern.permute.xlu0 %v2454_v0  ;;  %s2574_s9 = sshll.u32 %s2866_s29, 3  ;;  %p284_p2 = scmp.lt.s32.totalorder %s2433_s24, 1  ;;  %2319 = vset.pattern.permute.xlu1 %v2454_v0  ;;  %vm373_vm0 = vcmask 1042432   ;;  %v304_v2 = vld [vmem:[%s2861_s2 + $0x20] sm:$0xff]  ;;  %vm348_vm1 = vcmask 23552   ;;  %v302_v5 = vld [vmem:[%s2861_s2 + $0x10] sm:$0xff] }
  0x21   : > { %2320 = vset.pattern.permute.xlu2 %v2454_v0  ;;  %s283_s12 = scalar_select %p282_p1, %s2437_s25, 1  ;;  %340 = vperm.xlu0 %2318, %v306_v1   ;;  %v292_v3 = vld [vmem:[%s2860_s1] sm:$0xff]  ;;  %v307_v6 = vld [vmem:[%s2861_s2 + $0x38] sm:$0xff]  ;;  %v305_v7 = vld [vmem:[%s2861_s2 + $0x28] sm:$0xff]  ;;  %vm582_vm2 = vcmask 523264  }
  0x22   : > { %s285_s13 = scalar_select %p284_p2, %s2433_s24, 1  ;;  %330 = vperm.xlu1 %2319, %v304_v2   ;;  %320 = vperm.xlu2 %2320, %v302_v5   ;;  %v293_v8 = vld [vmem:[%s2860_s1 + $0x8] sm:$0xff]  ;;  %v303_v9 = vld [vmem:[%s2861_s2 + $0x18] sm:$0xff]  ;;  %v300_v10 = vld [vmem:[%s2861_s2] sm:$0xff] }
  0x23   : > { %s1840_s14 = sshll.u32 %s283_s12, 1  ;;  %v301_v11 = vld [vmem:[%s2861_s2 + $0x8] sm:$0xff]  ;;  %v294_v12 = vld [vmem:[%s2860_s1 + $0x10] sm:$0xff]  ;;  %v446_v13 = vld [vmem:[%s2863_s4] sm:$0xff]  ;;  %s2799_s5 = scalar_lea.vmem [#allocation5], %s2574_s9 }
  0x24   : > { %s287_s15 = sadd.s32 %s1840_s14, %s285_s13  ;;  %v447_v14 = vld [vmem:[%s2863_s4 + $0x8] sm:$0xff]  ;;  %v448_v15 = vld [vmem:[%s2863_s4 + $0x10] sm:$0xff]  ;;  %v295_v16 = vld [vmem:[%s2860_s1 + $0x18] sm:$0xff]  ;;  %p2147_p4 = scmp.ne.s32.totalorder %s2433_s24, 0 }
  0x25   : > { %s1841_s19 = sshll.u32 %s287_s15, 2  ;;  %v449_v17 = vld [vmem:[%s2863_s4 + $0x18] sm:$0xff]  ;;  %v450_v18 = vld [vmem:[%s2863_s4 + $0x20] sm:$0xff]  ;;  %v451_v19 = vld [vmem:[%s2863_s4 + $0x28] sm:$0xff] }
  0x26   : > { %s289_s8 = scalar_lea.vmem %s2859_s0, %s1841_s19  ;;  %v296_v20 = vld [vmem:[%s2860_s1 + $0x20] sm:$0xff]  ;;  %v452_v21 = vld [vmem:[%s2863_s4 + $0x30] sm:$0xff]  ;;  %v453_v22 = vld [vmem:[%s2863_s4 + $0x38] sm:$0xff] }
  0x27   : > { %v291_v4 = vld [vmem:[%s289_s8] sm:$0x7]  ;;  %v297_v24 = vld [vmem:[%s2860_s1 + $0x28] sm:$0xff]  ;;  %v456_v26 = vld [vmem:[%s2863_s4 + $0x50] sm:$0xff] }
  0x28   : > { %1842 = vmatpush.msk.msra.mxu0 %vm373_vm0, %v291_v4  ;;  %v454_v23 = vld [vmem:[%s2863_s4 + $0x40] sm:$0xff]  ;;  %v455_v25 = vld [vmem:[%s2863_s4 + $0x48] sm:$0xff]  ;;  %v457_v27 = vld [vmem:[%s2863_s4 + $0x58] sm:$0xff] }
  0x29   : > { %1843 = vmatmul.msk.f32.vlgmr.msra.gmra.mxu0 %vm348_vm1, %v292_v3  ;;  %345 = vperm.xlu0 %2318, %v307_v6   ;;  %v298_v28 = vld [vmem:[%s2860_s1 + $0x30] sm:$0xff]  ;;  %v458_v29 = vld [vmem:[%s2863_s4 + $0x60] sm:$0xff]  ;;  %v459_v30 = vld [vmem:[%s2863_s4 + $0x68] sm:$0xff] }
  0x2a   : > { %335 = vperm.xlu1 %2319, %v305_v7   ;;  %325 = vperm.xlu2 %2320, %v303_v9   ;;  %v460_v31 = vld [vmem:[%s2863_s4 + $0x70] sm:$0xff]  ;;  %v299_v32 = vld [vmem:[%s2860_s1 + $0x38] sm:$0xff]  ;;  %v2153_v6 = vld [vmem:[%s2862_s3] sm:$0xff] }
  0x2b   : > { %v461_v33 = vld [vmem:[%s2863_s4 + $0x78] sm:$0xff]  ;;  %v2154_v9 = vld [vmem:[%s2862_s3 + $0x8] sm:$0xff] }
  0x2c   : > { %v2156_v7 = vld [vmem:[%s2862_s3 + $0x18] sm:$0xff] }
  0x31   : > { %1844 = vmatmul.msk.f32.gmra.mxu0 %vm348_vm1, %v293_v8  ;;  %310 = vperm.xlu0 %2318, %v300_v10   ;;  %v2158_v8 = vld [vmem:[%s2862_s3 + $0x28] sm:$0xff]  ;;  %v2157_v10 = vld [vmem:[%s2862_s3 + $0x20] sm:$0xff] }
  0x32   : > { %315 = vperm.xlu1 %2319, %v301_v11   ;;  %464 = vperm.xlu2 %2320, %v446_v13   ;;  %v2159_v11 = vld [vmem:[%s2862_s3 + $0x30] sm:$0xff]  ;;  %v2160_v13 = vld [vmem:[%s2862_s3 + $0x38] sm:$0xff] }
  0x39   : > { %1845 = vmatmul.msk.f32.gmra.mxu0 %vm348_vm1, %v294_v12  ;;  %469 = vperm.xlu0 %2318, %v447_v14   ;;  %v2155_v12 = vld [vmem:[%s2862_s3 + $0x10] sm:$0xff] }
  0x3a   : > { %474 = vperm.xlu1 %2319, %v448_v15   ;;  %479 = vperm.xlu2 %2320, %v449_v17  }
  0x41   : > { %1846 = vmatmul.msk.f32.gmra.mxu0 %vm348_vm1, %v295_v16  ;;  %484 = vperm.xlu0 %2318, %v450_v18  }
  0x42   : > { %489 = vperm.xlu1 %2319, %v451_v19   ;;  %494 = vperm.xlu2 %2320, %v452_v21  }
  0x49   : > { %1847 = vmatmul.msk.f32.gmra.mxu0 %vm348_vm1, %v296_v20  ;;  %499 = vperm.xlu0 %2318, %v453_v22  }
  0x4a   : > { %504 = vperm.xlu1 %2319, %v454_v23   ;;  %509 = vperm.xlu2 %2320, %v455_v25  }
  0x51   : > { %1848 = vmatmul.msk.f32.gmra.mxu0 %vm348_vm1, %v297_v24  ;;  %514 = vperm.xlu0 %2318, %v456_v26  }
  0x52   : > { %519 = vperm.xlu1 %2319, %v457_v27   ;;  %524 = vperm.xlu2 %2320, %v458_v29  }
  0x59   : > { %1849 = vmatmul.msk.f32.gmra.mxu0 %vm348_vm1, %v298_v28  ;;  %529 = vperm.xlu0 %2318, %v459_v30  }
  0x5a   : > { %534 = vperm.xlu1 %2319, %v460_v31   ;;  %539 = vperm.xlu2 %2320, %v461_v33  }
  0x61   : > { %1850 = vmatmul.msk.f32.gmra.mxu0 %vm348_vm1, %v299_v32 }
  0x7c   : > { %v321_v43 = vpop.permute.xlu2 %320 }
  0x84   : > { %v326_v53 = vpop.permute.xlu2 %325 }
  0x8c   : > { %v465_v14 = vpop.permute.xlu2 %464 }
  0x93   : > { %v341_v41 = vpop.permute.xlu0 %340 }
  0x94   : > { %v331_v40 = vpop.permute.xlu1 %330  ;;  %v480_v26 = vpop.permute.xlu2 %479 }
  0x9b   : > { %v346_v45 = vpop.permute.xlu0 %345 }
  0x9c   : > { %v336_v44 = vpop.permute.xlu1 %335 }
  0xa3   : > { %v311_v60 = vpop.permute.xlu0 %310 }
  0xa4   : > { %v316_v57 = vpop.permute.xlu1 %315 }
  0xa6   : > { %v394_v34 = vpop.f32.mrf.mxu0 }
  0xa7   : > { %v395_v0 = vadd.f32 %v394_v34, %v311_v60  ;;  %v2222_v60 = vld [vmem:[#allocation2 + $0x1e4] sm:$0xf0] }
  0xa9   : > { %v418_v4 = vmax.f32 %v395_v0, 0.0 }
  0xab   : > { %v470_v18 = vpop.permute.xlu0 %469 }
  0xac   : > { %v475_v22 = vpop.permute.xlu1 %474 }
  0xae   : > { %v397_v35 = vpop.f32.mrf.mxu0 }
  0xaf   : > { %v398_v61 = vadd.f32 %v397_v35, %v316_v57 }
  0xb1   : > { %v419_v2 = vmax.f32 %v398_v61, 0.0 }
  0xb3   : > { %v442_v5 = vpack.c.bf16 %v419_v2, %v418_v4  ;;  %v485_v30 = vpop.permute.xlu0 %484  ;;  %v2093_v2 = vld [vmem:[#allocation2 + $0x188] sm:$0xf]  ;;  %v2217_v4 = vld [vmem:[#allocation2 + $0x1c4] sm:$0xf] }
  0xb4   : > { %v490_v35 = vpop.permute.xlu1 %489 }
  0xb6   : > { %v400_v36 = vpop.f32.mrf.mxu0 }
  0xb7   : > { %v401_v58 = vadd.f32 %v400_v36, %v321_v43 }
  0xb9   : > { %v420_v1 = vmax.f32 %v401_v58, 0.0 }
  0xbb   : > { %v500_v43 = vpop.permute.xlu0 %499 }
  0xbe   : > { %v403_v37 = vpop.f32.mrf.mxu0 }
  0xbf   : > { %v404_v54 = vadd.f32 %v403_v37, %v326_v53 }
  0xc1   : > { %v421_v62 = vmax.f32 %v404_v54, 0.0 }
  0xc3   : > { %v443_v3 = vpack.c.bf16 %v421_v62, %v420_v1 }
  0xc6   : > { %v406_v38 = vpop.f32.mrf.mxu0 }
  0xc7   : > { %v407_v50 = vadd.f32 %v406_v38, %v331_v40 }
  0xc9   : > { %v422_v59 = vmax.f32 %v407_v50, 0.0 }
  0xce   : > { %v409_v39 = vpop.f32.mrf.mxu0 }
  0xcf   : > { %v410_v48 = vadd.f32 %v409_v39, %v336_v44  ;;  %v495_v39 = vpop.permute.xlu2 %494 }
  0xd1   : > { %v423_v55 = vmax.f32 %v410_v48, 0.0 }
  0xd3   : > { %v444_v63 = vpack.c.bf16 %v423_v55, %v422_v59  ;;  %v2125_v59 = vld [vmem:[#allocation2 + $0x1c8] sm:$0xf] }
  0xd6   : > { %v412_v42 = vpop.f32.mrf.mxu0 }
  0xd7   : > { %v413_v46 = vadd.f32 %v412_v42, %v341_v41 }
  0xd9   : > { %v424_v51 = vmax.f32 %v413_v46, 0.0 }
  0xde   : > { %v415_v47 = vpop.f32.mrf.mxu0 }
  0xdf   : > { %v416_v49 = vadd.f32 %v415_v47, %v346_v45  ;;  %v505_v47 = vpop.permute.xlu1 %504 }
  0xe1   : > { %v425_v52 = vmax.f32 %v416_v49, 0.0 }
  0xe3   : > { %v445_v56 = vpack.c.bf16 %v425_v52, %v424_v51  ;;  %v510_v52 = vpop.permute.xlu2 %509 }
  0xe5   : > { %611 = vmatpush.bf16.msra.mxu1 %v445_v56  ;;  %2225 = vmatpush.bf16.msra.mxu2 %v445_v56 }
  0xe6   : > { %2226 = vmatpush.bf16.msra.mxu3 %v445_v56  ;;  %v515_v56 = vpop.permute.xlu0 %514 }
  0xe7   : > { %v520_v61 = vpop.permute.xlu1 %519 }
  0xe9   : > { %612 = vmatpush.bf16.msra.mxu1 %v444_v63  ;;  %2227 = vmatpush.bf16.msra.mxu2 %v444_v63 }
  0xea   : > { %2228 = vmatpush.bf16.msra.mxu3 %v444_v63  ;;  %v2126_v63 = vor.u32 %v2222_v60, %v2125_v59  ;;  %v2021_v59 = vld [vmem:[#allocation2 + $0x100] sm:$0xf] }
  0xeb   : > { %v2197_v60 = vld [vmem:[#allocation2 + $0x11c] sm:$0xf0] }
  0xec   : > { %1194 = vmatpush.bf16.msrb.mxu0 %v2126_v63  ;;  %v1999_v63 = vld [vmem:[#allocation2 + $0xe8] sm:$0xf0] }
  0xed   : > { %613 = vmatpush.bf16.msra.mxu1 %v443_v3  ;;  %2229 = vmatpush.bf16.msra.mxu2 %v443_v3 }
  0xee   : > { %2230 = vmatpush.bf16.msra.mxu3 %v443_v3  ;;  %v2214_v3 = vld [vmem:[#allocation2 + $0x1a4] sm:$0xf0] }
  0xf1   : > { %614 = vmatpush.bf16.msra.mxu1 %v442_v5  ;;  %2231 = vmatpush.bf16.msra.mxu2 %v442_v5 }
  0xf2   : > { %2232 = vmatpush.bf16.msra.mxu3 %v442_v5  ;;  %v525_v5 = vpop.permute.xlu2 %524 }
  0xf4   : > { %1883 = vmatmul.msk.bf16.vlgmr.msra.gmra.mxu1 %vm582_vm2, %v2153_v6  ;;  %1886 = vmatmul.msk.bf16.vlgmr.msra.gmra.mxu2 %vm582_vm2, %v2156_v7  ;;  %v2094_v6 = vor.u32 %v2214_v3, %v2093_v2  ;;  %v2119_v7 = vld [vmem:[#allocation2 + $0x1e0] sm:$0xf0]  ;;  %v2022_v2 = vor.u32 %v2197_v60, %v2021_v59  ;;  %v2215_v59 = vld [vmem:[#allocation2 + $0x1ac] sm:$0xf0]  ;;  %v2211_v60 = vld [vmem:[#allocation2 + $0x194] sm:$0xf] }
  0xf5   : > { %1888 = vmatmul.msk.bf16.vlgmr.msra.gmra.mxu3 %vm582_vm2, %v2158_v8  ;;  %v2209_v8 = vld [vmem:[#allocation2 + $0x184] sm:$0xf] }
  0xf6   : > { %1195 = vmatpush.bf16.msrb.mxu0 %v2094_v6  ;;  %v2177_v3 = vld [vmem:[#allocation2 + $0x84] sm:$0xf] }
 0x104   : > { %1884 = vmatmul.msk.bf16.gmra.mxu1 %vm582_vm2, %v2154_v9  ;;  %1887 = vmatmul.msk.bf16.gmra.mxu2 %vm582_vm2, %v2157_v10  ;;  %v2087_v9 = vld [vmem:[#allocation2 + $0x1a0] sm:$0xf0] }
 0x105   : > { %1889 = vmatmul.msk.bf16.gmra.mxu3 %vm582_vm2, %v2159_v11  ;;  %v2122_v11 = vor.u32 %v2217_v4, %v2119_v7  ;;  %v1959_v4 = vld [vmem:[#allocation2 + $0xa0] sm:$0xf0]  ;;  %v1989_v7 = vld [vmem:[#allocation2 + $0xc0] sm:$0xf] }
 0x107   : > { %1145 = vmatpush.bf16.msrb.mxu3 %v2122_v11  ;;  %v1962_v11 = vor.u32 %v2177_v3, %v1959_v4  ;;  %v2212_v3 = vld [vmem:[#allocation2 + $0x19c] sm:$0xf] }
 0x114   : > { %1885 = vmatmul.msk.bf16.gmra.mxu1 %vm582_vm2, %v2155_v12  ;;  %v2061_v12 = vld [vmem:[#allocation2 + $0x148] sm:$0xf] }
 0x115   : > { %1890 = vmatmul.msk.bf16.gmra.mxu3 %vm582_vm2, %v2160_v13  ;;  %v2206_v13 = vld [vmem:[#allocation2 + $0x164] sm:$0xf0] }
 0x171   : > { %v616_v15 = vpop.f32.mrf.mxu1 }
 0x172   : > { %v617_v16 = vadd.f32 %v616_v15, %v465_v14  ;;  %v2218_v14 = vld [vmem:[#allocation2 + $0x1cc] sm:$0xf] }
 0x174   : > { %v656_v17 = vmax.f32 %v617_v16, 0.0  ;;  %v2062_v16 = vor.u32 %v2206_v13, %v2061_v12  ;;  %v2169_v13 = vld [vmem:[#allocation2 + $0x44] sm:$0xf] }
 0x176   : > { %672 = vxpose.xlu0.b32.start [1/16] %v656_v17, 128  ;;  %v2127_v17 = vld [vmem:[#allocation2 + $0x1e8] sm:$0xf0]  ;;  %1196 = vmatpush.bf16.msrb.mxu0 %v2062_v16  ;;  %v1957_v16 = vld [vmem:[#allocation2 + $0x80] sm:$0xf] }
 0x177   : > { %v631_v34 = vpop.f32.mrf.mxu2 }
 0x178   : > { %v632_v40 = vadd.f32 %v631_v34, %v495_v39  ;;  %v641_v49 = vpop.f32.mrf.mxu3  ;;  %v2085_v34 = vld [vmem:[#allocation2 + $0x180] sm:$0xf]  ;;  %v530_v39 = vpop.permute.xlu0 %529 }
 0x179   : > { %v618_v19 = vpop.f32.mrf.mxu1  ;;  %v642_v57 = vadd.f32 %v641_v49, %v515_v56  ;;  %v2031_v49 = vld [vmem:[#allocation2 + $0x128] sm:$0xf0]  ;;  %v1991_v56 = vld [vmem:[#allocation2 + $0xe0] sm:$0xf0] }
 0x17a   : > { %v619_v20 = vadd.f32 %v618_v19, %v470_v18  ;;  %v662_v42 = vmax.f32 %v632_v40, 0.0  ;;  %v2201_v18 = vld [vmem:[#allocation2 + $0x144] sm:$0xf] }
 0x17b   : > { %v666_v58 = vmax.f32 %v642_v57, 0.0  ;;  %v2055_v19 = vld [vmem:[#allocation2 + $0x160] sm:$0xf0] }
 0x17c   : > { %v657_v21 = vmax.f32 %v619_v20, 0.0  ;;  %v2090_v20 = vor.u32 %v2209_v8, %v2087_v9  ;;  %v2193_v40 = vld [vmem:[#allocation2 + $0x104] sm:$0xf]  ;;  %v2189_v8 = vld [vmem:[#allocation2 + $0xdc] sm:$0xf0] }
 0x17d   : > { %v2178_v9 = vld [vmem:[#allocation2 + $0x8c] sm:$0xf]  ;;  %v1990_v12 = vor.u32 %v2189_v8, %v1989_v7 }
 0x17e   : > { %673 = vxpose.xlu0.b32.cont [2/16] %v657_v21, 128  ;;  %v2130_v21 = vor.u32 %v2218_v14, %v2127_v17  ;;  %1146 = vmatpush.bf16.msrb.mxu3 %v2090_v20  ;;  %v1927_v14 = vld [vmem:[#allocation2 + $0x60] sm:$0xf0]  ;;  %v2181_v17 = vld [vmem:[#allocation2 + $0x9c] sm:$0xf0] }
 0x17f   : > { %v633_v41 = vpop.f32.mrf.mxu2  ;;  %v1930_v20 = vor.u32 %v2169_v13, %v1927_v14  ;;  %v2071_v13 = vld [vmem:[#allocation2 + $0x170] sm:$0xf0] }
 0x180   : > { %v634_v44 = vadd.f32 %v633_v41, %v500_v43  ;;  %v643_v55 = vpop.f32.mrf.mxu3  ;;  %1243 = vmatpush.bf16.msrb.mxu1 %v2130_v21  ;;  %v2023_v41 = vld [vmem:[#allocation2 + $0x120] sm:$0xf0]  ;;  %v540_v21 = vpop.permute.xlu2 %539 }
 0x181   : > { %v621_v23 = vpop.f32.mrf.mxu1  ;;  %v644_v0 = vadd.f32 %v643_v55, %v520_v61  ;;  %v2185_v55 = vld [vmem:[#allocation2 + $0xc4] sm:$0xf] }
 0x182   : > { %v622_v24 = vadd.f32 %v621_v23, %v475_v22  ;;  %v663_v46 = vmax.f32 %v634_v44, 0.0  ;;  %v2210_v22 = vld [vmem:[#allocation2 + $0x18c] sm:$0xf] }
 0x183   : > { %v667_v1 = vmax.f32 %v644_v0, 0.0  ;;  %v2095_v23 = vld [vmem:[#allocation2 + $0x1a8] sm:$0xf0]  ;;  %v1994_v0 = vor.u32 %v2185_v55, %v1991_v56  ;;  %v2143_v56 = vld [vmem:[#allocation2 + $0x1f8] sm:$0xf0] }
 0x184   : > { %v658_v25 = vmax.f32 %v622_v24, 0.0  ;;  %v2029_v24 = vld [vmem:[#allocation2 + $0x108] sm:$0xf] }
 0x186   : > { %674 = vxpose.xlu0.b32.cont [3/16] %v658_v25, 128  ;;  %v2198_v25 = vld [vmem:[#allocation2 + $0x124] sm:$0xf0] }
 0x187   : > { %v636_v45 = vpop.f32.mrf.mxu2 }
 0x188   : > { %v637_v48 = vadd.f32 %v636_v45, %v505_v47  ;;  %v646_v62 = vpop.f32.mrf.mxu3  ;;  %v2053_v45 = vld [vmem:[#allocation2 + $0x140] sm:$0xf] }
 0x189   : > { %v623_v27 = vpop.f32.mrf.mxu1  ;;  %v647_v10 = vadd.f32 %v646_v62, %v525_v5  ;;  %v2186_v62 = vld [vmem:[#allocation2 + $0xcc] sm:$0xf] }
 0x18a   : > { %v624_v28 = vadd.f32 %v623_v27, %v480_v26  ;;  %v664_v50 = vmax.f32 %v637_v48, 0.0  ;;  %v2117_v26 = vld [vmem:[#allocation2 + $0x1c0] sm:$0xf]  ;;  %v2194_v48 = vld [vmem:[#allocation2 + $0x10c] sm:$0xf]  ;;  %v2002_v6 = vor.u32 %v2186_v62, %v1999_v63 }
 0x18b   : > { %v2221_v27 = vld [vmem:[#allocation2 + $0x1dc] sm:$0xf0]  ;;  %v2103_v62 = vld [vmem:[#allocation2 + $0x1b0] sm:$0xf0] }
 0x18c   : > { %v659_v29 = vmax.f32 %v624_v28, 0.0  ;;  %v668_v28 = vmax.f32 %v647_v10, 0.0  ;;  %v1967_v10 = vld [vmem:[#allocation2 + $0xa8] sm:$0xf0]  ;;  %v2106_v63 = vor.u32 %v2211_v60, %v2103_v62  ;;  %v2184_v62 = vld [vmem:[#allocation2 + $0xb4] sm:$0xf0] }
 0x18e   : > { %675 = vxpose.xlu0.b32.cont [4/16] %v659_v29, 128  ;;  %v2098_v29 = vor.u32 %v2210_v22, %v2095_v23  ;;  %v1958_v22 = vor.u32 %v2181_v17, %v1957_v16  ;;  %v2077_v16 = vld [vmem:[#allocation2 + $0x158] sm:$0xf] }
 0x18f   : > { %v638_v51 = vpop.f32.mrf.mxu2  ;;  %v2208_v17 = vld [vmem:[#allocation2 + $0x174] sm:$0xf0] }
 0x190   : > { %v639_v53 = vadd.f32 %v638_v51, %v510_v52  ;;  %v648_v15 = vpop.f32.mrf.mxu3  ;;  %1244 = vmatpush.bf16.msrb.mxu1 %v2098_v29  ;;  %v1965_v51 = vld [vmem:[#allocation2 + $0x88] sm:$0xf]  ;;  %v2173_v29 = vld [vmem:[#allocation2 + $0x5c] sm:$0xf0] }
 0x191   : > { %v626_v31 = vpop.f32.mrf.mxu1  ;;  %v649_v43 = vadd.f32 %v648_v15, %v530_v39  ;;  %v2182_v52 = vld [vmem:[#allocation2 + $0xa4] sm:$0xf0] }
 0x192   : > { %v627_v32 = vadd.f32 %v626_v31, %v485_v30  ;;  %v665_v54 = vmax.f32 %v639_v53, 0.0  ;;  %v2118_v30 = vor.u32 %v2221_v27, %v2117_v26  ;;  %v2202_v31 = vld [vmem:[#allocation2 + $0x14c] sm:$0xf]  ;;  %v1966_v61 = vor.u32 %v2182_v52, %v1965_v51  ;;  %v2174_v26 = vld [vmem:[#allocation2 + $0x64] sm:$0xf0] }
 0x193   : > { %v669_v57 = vmax.f32 %v649_v43, 0.0  ;;  %v1925_v27 = vld [vmem:[#allocation2 + $0x40] sm:$0xf]  ;;  %v1901_v39 = vld [vmem:[#allocation2 + $0x8] sm:$0xf] }
 0x194   : > { %v660_v33 = vmax.f32 %v627_v32, 0.0  ;;  %v2030_v32 = vor.u32 %v2198_v25, %v2029_v24  ;;  %1096 = vmatpush.bf16.msrb.mxu2 %v2118_v30  ;;  %v1933_v25 = vld [vmem:[#allocation2 + $0x48] sm:$0xf]  ;;  %v2170_v30 = vld [vmem:[#allocation2 + $0x4c] sm:$0xf] }
 0x195   : > { %v2162_v43 = vld [vmem:[#allocation2 + $0xc] sm:$0xf]  ;;  %v2141_v52 = vld [vmem:[#allocation2 + $0x1d8] sm:$0xf] }
 0x196   : > { %676 = vxpose.xlu0.b32.cont [5/16] %v660_v33, 128  ;;  %v2063_v33 = vld [vmem:[#allocation2 + $0x168] sm:$0xf0]  ;;  %1197 = vmatpush.bf16.msrb.mxu0 %v2030_v32  ;;  %v1926_v32 = vor.u32 %v2173_v29, %v1925_v27 }
 0x197   : > { %v2066_v44 = vor.u32 %v2202_v31, %v2063_v33  ;;  %v1935_v31 = vld [vmem:[#allocation2 + $0x68] sm:$0xf0] }
 0x198   : > { %v651_v53 = vpop.f32.mrf.mxu3  ;;  %v1938_v33 = vor.u32 %v2170_v30, %v1935_v31  ;;  %v2045_v31 = vld [vmem:[#allocation2 + $0x118] sm:$0xf] }
 0x199   : > { %v628_v36 = vpop.f32.mrf.mxu1  ;;  %1245 = vmatpush.bf16.msrb.mxu1 %v2066_v44  ;;  %v1903_v44 = vld [vmem:[#allocation2 + $0x28] sm:$0xf0] }
 0x19a   : > { %v629_v37 = vadd.f32 %v628_v36, %v490_v35  ;;  %v2213_v35 = vld [vmem:[#allocation2 + $0x19c] sm:$0xf0]  ;;  %v2058_v36 = vor.u32 %v2201_v18, %v2055_v19  ;;  %v1970_v18 = vor.u32 %v2178_v9, %v1967_v10  ;;  %v2069_v9 = vld [vmem:[#allocation2 + $0x150] sm:$0xf] }
 0x19b   : > { %v2207_v10 = vld [vmem:[#allocation2 + $0x16c] sm:$0xf0] }
 0x19c   : > { %v661_v38 = vmax.f32 %v629_v37, 0.0  ;;  %v1997_v37 = vld [vmem:[#allocation2 + $0xc8] sm:$0xf]  ;;  %1147 = vmatpush.bf16.msrb.mxu3 %v2058_v36  ;;  %v1893_v36 = vld [vmem:[#allocation2] sm:$0xf] }
 0x19e   : > { %677 = vxpose.xlu0.b32.cont [6/16] %v661_v38, 128  ;;  %v2190_v38 = vld [vmem:[#allocation2 + $0xe4] sm:$0xf0] }
 0x19f   : > { %v1998_v47 = vor.u32 %v2190_v38, %v1997_v37  ;;  %v2165_v38 = vld [vmem:[#allocation2 + $0x1c] sm:$0xf0] }
 0x1a0   : > { %v653_v19 = vpop.f32.mrf.mxu3 }
 0x1a1   : > { %1198 = vmatpush.bf16.msrb.mxu0 %v1998_v47  ;;  %v654_v23 = vadd.f32 %v653_v19, %v540_v21  ;;  %v2223_v47 = vld [vmem:[#allocation2 + $0x1ec] sm:$0xf0]  ;;  %v2078_v19 = vor.u32 %v2208_v17, %v2077_v16  ;;  %v1951_v17 = vld [vmem:[#allocation2 + $0x78] sm:$0xf0] }
 0x1a3   : > { %v671_v24 = vmax.f32 %v654_v23, 0.0 }
 0x1a5   : > { %1199 = vmatpush.bf16.msrb.mxu0 %v1966_v61 }
 0x1a6   : > { %678 = vxpose.xlu0.b32.cont [7/16] %v662_v42, 128  ;;  %v2086_v42 = vor.u32 %v2213_v35, %v2085_v34  ;;  %v2161_v34 = vld [vmem:[#allocation2 + $0x4] sm:$0xf] }
 0x1a7   : > { %v1895_v35 = vld [vmem:[#allocation2 + $0x20] sm:$0xf0] }
 0x1a8   : > { %1097 = vmatpush.bf16.msrb.mxu2 %v2086_v42  ;;  %v1898_v37 = vor.u32 %v2161_v34, %v1895_v35  ;;  %v2047_v35 = vld [vmem:[#allocation2 + $0x138] sm:$0xf0] }
 0x1ae   : > { %679 = vxpose.xlu0.b32.cont [8/16] %v663_v46, 128  ;;  %v2205_v46 = vld [vmem:[#allocation2 + $0x15c] sm:$0xf0] }
 0x1b6   : > { %680 = vxpose.xlu0.b32.cont [9/16] %v664_v50, 128  ;;  %v2026_v50 = vor.u32 %v2193_v40, %v2023_v41  ;;  %v2166_v40 = vld [vmem:[#allocation2 + $0x24] sm:$0xf0]  ;;  %v1894_v41 = vor.u32 %v2165_v38, %v1893_v36 }
 0x1b7   : > { %v1902_v42 = vor.u32 %v2166_v40, %v1901_v39  ;;  %v2005_v39 = vld [vmem:[#allocation2 + $0xd0] sm:$0xf] }
 0x1b8   : > { %1148 = vmatpush.bf16.msrb.mxu3 %v2026_v50  ;;  %v2135_v50 = vld [vmem:[#allocation2 + $0x1f0] sm:$0xf0]  ;;  %v2191_v40 = vld [vmem:[#allocation2 + $0xec] sm:$0xf0] }
 0x1bc   : > { %1149 = vmatpush.bf16.msrb.mxu3 %v1994_v0 }
 0x1be   : > { %681 = vxpose.xlu0.b32.cont [10/16] %v665_v54, 128  ;;  %v2054_v54 = vor.u32 %v2205_v46, %v2053_v45  ;;  %v1906_v45 = vor.u32 %v2162_v43, %v1903_v44  ;;  %v2133_v46 = vld [vmem:[#allocation2 + $0x1d0] sm:$0xf]  ;;  %v2007_v43 = vld [vmem:[#allocation2 + $0xf0] sm:$0xf0] }
 0x1c0   : > { %1098 = vmatpush.bf16.msrb.mxu2 %v2054_v54  ;;  %1150 = vmatpush.bf16.msrb.mxu3 %v1962_v11  ;;  %v2220_v54 = vld [vmem:[#allocation2 + $0x1dc] sm:$0xf]  ;;  %v2203_v11 = vld [vmem:[#allocation2 + $0x154] sm:$0xf] }
 0x1c1   : > { %v2074_v14 = vor.u32 %v2203_v11, %v2071_v13  ;;  %v1949_v13 = vld [vmem:[#allocation2 + $0x58] sm:$0xf] }
 0x1c4   : > { %1099 = vmatpush.bf16.msrb.mxu2 %v2022_v2  ;;  %1151 = vmatpush.bf16.msrb.mxu3 %v1930_v20  ;;  %v2216_v2 = vld [vmem:[#allocation2 + $0x1b4] sm:$0xf0]  ;;  %v2079_v20 = vld [vmem:[#allocation2 + $0x178] sm:$0xf0] }
 0x1c6   : > { %682 = vxpose.xlu0.b32.cont [11/16] %v666_v58, 128  ;;  %v2034_v58 = vor.u32 %v2194_v48, %v2031_v49  ;;  %v2219_v48 = vld [vmem:[#allocation2 + $0x1d4] sm:$0xf]  ;;  %v2134_v49 = vor.u32 %v2223_v47, %v2133_v46  ;;  %v2013_v46 = vld [vmem:[#allocation2 + $0xd8] sm:$0xf] }
 0x1c7   : > { %v2138_v51 = vor.u32 %v2219_v48, %v2135_v50  ;;  %v2192_v47 = vld [vmem:[#allocation2 + $0xf4] sm:$0xf0]  ;;  %v2188_v48 = vld [vmem:[#allocation2 + $0xdc] sm:$0xf] }
 0x1c8   : > { %1246 = vmatpush.bf16.msrb.mxu1 %v2034_v58  ;;  %1100 = vmatpush.bf16.msrb.mxu2 %v1990_v12  ;;  %v2101_v58 = vld [vmem:[#allocation2 + $0x190] sm:$0xf]  ;;  %v2070_v12 = vor.u32 %v2207_v10, %v2069_v9  ;;  %v2015_v50 = vld [vmem:[#allocation2 + $0xf8] sm:$0xf0]  ;;  %v1943_v10 = vld [vmem:[#allocation2 + $0x70] sm:$0xf0] }
 0x1c9   : > { %1152 = vmatpush.bf16.msrb.mxu3 %v1898_v37  ;;  %v2102_v61 = vor.u32 %v2215_v59, %v2101_v58  ;;  %v1975_v58 = vld [vmem:[#allocation2 + $0xb0] sm:$0xf0] }
 0x1cc   : > { %1247 = vmatpush.bf16.msrb.mxu1 %v2002_v6  ;;  %1101 = vmatpush.bf16.msrb.mxu2 %v1958_v22 }
 0x1cd   : > { %1341 = vmatpush.bf16.msra.mxu3 %v2138_v51  ;;  %v2018_v51 = vor.u32 %v2188_v48, %v2015_v50 }
 0x1ce   : > { %683 = vxpose.xlu0.b32.cont [12/16] %v667_v1, 128  ;;  %v535_v1 = vpop.permute.xlu1 %534 }
 0x1cf   : > { %v652_v5 = vadd.f32 %v651_v53, %v535_v1  ;;  %v2224_v53 = vld [vmem:[#allocation2 + $0x1f4] sm:$0xf0] }
 0x1d0   : > { %1248 = vmatpush.bf16.msrb.mxu1 %v1970_v18  ;;  %1102 = vmatpush.bf16.msrb.mxu2 %v1926_v32  ;;  %v2142_v55 = vor.u32 %v2224_v53, %v2141_v52  ;;  %v2109_v1 = vld [vmem:[#allocation2 + $0x198] sm:$0xf]  ;;  %v2204_v18 = vld [vmem:[#allocation2 + $0x15c] sm:$0xf] }
 0x1d1   : > { %v670_v15 = vmax.f32 %v652_v5, 0.0  ;;  %1342 = vmatpush.bf16.msra.mxu3 %v2106_v63  ;;  %v2110_v4 = vor.u32 %v2216_v2, %v2109_v1  ;;  %v2111_v5 = vld [vmem:[#allocation2 + $0x1b8] sm:$0xf0]  ;;  %v2082_v21 = vor.u32 %v2204_v18, %v2079_v20  ;;  %v2200_v32 = vld [vmem:[#allocation2 + $0x134] sm:$0xf0] }
 0x1d2   : > { %v2114_v6 = vor.u32 %v2212_v3, %v2111_v5  ;;  %v2046_v34 = vor.u32 %v2200_v32, %v2045_v31  ;;  %v2180_v63 = vld [vmem:[#allocation2 + $0x9c] sm:$0xf]  ;;  %v1941_v5 = vld [vmem:[#allocation2 + $0x50] sm:$0xf] }
 0x1d3   : > { %v1983_v1 = vld [vmem:[#allocation2 + $0xb8] sm:$0xf0] }
 0x1d4   : > { %1249 = vmatpush.bf16.msrb.mxu1 %v1938_v33  ;;  %1103 = vmatpush.bf16.msrb.mxu2 %v1894_v41  ;;  %v2196_v33 = vld [vmem:[#allocation2 + $0x11c] sm:$0xf]  ;;  %v2187_v41 = vld [vmem:[#allocation2 + $0xd4] sm:$0xf]  ;;  %v1986_v2 = vor.u32 %v2180_v63, %v1983_v1 }
 0x1d5   : > { %1343 = vmatpush.bf16.msra.mxu3 %v2074_v14  ;;  %v2050_v36 = vor.u32 %v2196_v33, %v2047_v35  ;;  %v2010_v44 = vor.u32 %v2187_v41, %v2007_v43  ;;  %v2176_v14 = vld [vmem:[#allocation2 + $0x74] sm:$0xf0]  ;;  %v2164_v31 = vld [vmem:[#allocation2 + $0x1c] sm:$0xf] }
 0x1d6   : > { %684 = vxpose.xlu0.b32.cont [13/16] %v668_v28, 128  ;;  %v1934_v28 = vor.u32 %v2174_v26, %v1933_v25  ;;  %v2199_v25 = vld [vmem:[#allocation2 + $0x12c] sm:$0xf0]  ;;  %v2195_v26 = vld [vmem:[#allocation2 + $0x114] sm:$0xf]  ;;  %v1950_v16 = vor.u32 %v2176_v14, %v1949_v13  ;;  %v1919_v32 = vld [vmem:[#allocation2 + $0x38] sm:$0xf0] }
 0x1d7   : > { %v1922_v33 = vor.u32 %v2164_v31, %v1919_v32 }
 0x1d8   : > { %1200 = vmatpush.bf16.msrb.mxu0 %v1934_v28  ;;  %1250 = vmatpush.bf16.msrb.mxu1 %v1906_v45  ;;  %v2039_v28 = vld [vmem:[#allocation2 + $0x130] sm:$0xf0] }
 0x1d9   : > { %1292 = vmatpush.bf16.msra.mxu2 %v2134_v49  ;;  %v2042_v29 = vor.u32 %v2195_v26, %v2039_v28  ;;  %v2014_v49 = vor.u32 %v2192_v47, %v2013_v46  ;;  %v1911_v26 = vld [vmem:[#allocation2 + $0x30] sm:$0xf0]  ;;  %v2168_v28 = vld [vmem:[#allocation2 + $0x34] sm:$0xf0] }
 0x1db   : > { %1344 = vmatpush.bf16.msra.mxu3 %v2042_v29 }
 0x1dc   : > { %1201 = vmatpush.bf16.msrb.mxu0 %v1902_v42  ;;  %v2006_v42 = vor.u32 %v2191_v40, %v2005_v39 }
 0x1dd   : > { %1293 = vmatpush.bf16.msra.mxu2 %v2102_v61  ;;  %v1981_v61 = vld [vmem:[#allocation2 + $0x98] sm:$0xf] }
 0x1de   : > { %685 = vxpose.xlu0.b32.cont [14/16] %v669_v57, 128  ;;  %v2146_v57 = vor.u32 %v2220_v54, %v2143_v56  ;;  %v1973_v54 = vld [vmem:[#allocation2 + $0x90] sm:$0xf]  ;;  %v2179_v56 = vld [vmem:[#allocation2 + $0x94] sm:$0xf] }
 0x1df   : > { %1345 = vmatpush.bf16.msra.mxu3 %v2010_v44  ;;  %v1978_v59 = vor.u32 %v2179_v56, %v1975_v58 }
 0x1e0   : > { %1390 = vmatpush.bf16.msra.mxu0 %v2142_v55  ;;  %1439 = vmatpush.bf16.msra.mxu1 %v2146_v57  ;;  %v2183_v55 = vld [vmem:[#allocation2 + $0xac] sm:$0xf0] }
 0x1e1   : > { %1294 = vmatpush.bf16.msra.mxu2 %v2070_v12  ;;  %v1974_v57 = vor.u32 %v2183_v55, %v1973_v54 }
 0x1e3   : > { %1346 = vmatpush.bf16.msra.mxu3 %v1978_v59 }
 0x1e4   : > { %1391 = vmatpush.bf16.msra.mxu0 %v2110_v4  ;;  %1440 = vmatpush.bf16.msra.mxu1 %v2114_v6  ;;  %v2175_v6 = vld [vmem:[#allocation2 + $0x6c] sm:$0xf0] }
 0x1e5   : > { %v1942_v9 = vor.u32 %v2175_v6, %v1941_v5 }
 0x1e6   : > { %686 = vxpose.xlu0.b32.cont [15/16] %v670_v15, 128 }
 0x1e8   : > { %1392 = vmatpush.bf16.msra.mxu0 %v2078_v19  ;;  %1441 = vmatpush.bf16.msra.mxu1 %v2082_v21  ;;  %v1909_v21 = vld [vmem:[#allocation2 + $0x10] sm:$0xf] }
 0x1ec   : > { %1393 = vmatpush.bf16.msra.mxu0 %v2046_v34  ;;  %1442 = vmatpush.bf16.msra.mxu1 %v2050_v36 }
 0x1ee   : > { %687 = vxpose.xlu0.b32.end [16/16] %v671_v24, 128  ;;  %v2037_v24 = vld [vmem:[#allocation2 + $0x110] sm:$0xf] }
 0x1ef   : > { %v2038_v27 = vor.u32 %v2199_v25, %v2037_v24  ;;  %v2163_v24 = vld [vmem:[#allocation2 + $0x14] sm:$0xf] }
 0x1f0   : > { %1394 = vmatpush.bf16.msra.mxu0 %v2014_v49  ;;  %1443 = vmatpush.bf16.msra.mxu1 %v2018_v51  ;;  %v1914_v29 = vor.u32 %v2163_v24, %v1911_v26 }
 0x1f1   : > { %1295 = vmatpush.bf16.msra.mxu2 %v2038_v27  ;;  %v1917_v27 = vld [vmem:[#allocation2 + $0x18] sm:$0xf] }
 0x1f4   : > { %1444 = vmatpush.bf16.msra.mxu1 %v1986_v2 }
 0x1f5   : > { %1296 = vmatpush.bf16.msra.mxu2 %v2006_v42 }
 0x1f9   : > { %1297 = vmatpush.bf16.msra.mxu2 %v1974_v57 }
 0x1fd   : > { %1298 = vmatpush.bf16.msra.mxu2 %v1942_v9 }
 0x21a   : > { %v688_v0 = vpop.trf.xlu0 }
 0x222   : > { %v689_v7 = vpop.trf.xlu0 }
 0x223   : > { %v2710_v8 = vpack.c.bf16 %v689_v7, %v688_v0  ;;  %v1982_v0 = vor.u32 %v2184_v62, %v1981_v61  ;;  %v2171_v7 = vld [vmem:[#allocation2 + $0x54] sm:$0xf] }
 0x224   : > { %v1946_v11 = vor.u32 %v2171_v7, %v1943_v10 }
 0x225   : > { %1104 = vmatmul.bf16.vlgmr.msrb.gmra.mxu2 %v2710_v8  ;;  %1153 = vmatmul.bf16.vlgmr.msrb.gmra.mxu3 %v2710_v8 }
 0x226   : > { %1202 = vmatmul.bf16.vlgmr.msrb.gmra.mxu0 %v2710_v8  ;;  %1251 = vmatmul.bf16.vlgmr.msrb.gmra.mxu1 %v2710_v8 }
 0x227   : > { %1395 = vmatpush.bf16.msra.mxu0 %v1982_v0  ;;  %1347 = vmatpush.bf16.msra.mxu3 %v1946_v11 }
 0x22a   : > { %v690_v15 = vpop.trf.xlu0 }
 0x22b   : > { %1396 = vmatpush.bf16.msra.mxu0 %v1950_v16  ;;  %1348 = vmatpush.bf16.msra.mxu3 %v1914_v29 }
 0x232   : > { %v691_v22 = vpop.trf.xlu0 }
 0x233   : > { %v2716_v23 = vpack.c.bf16 %v691_v22, %v690_v15  ;;  %v2172_v15 = vld [vmem:[#allocation2 + $0x5c] sm:$0xf]  ;;  %v2167_v22 = vld [vmem:[#allocation2 + $0x2c] sm:$0xf0] }
 0x234   : > { %v1954_v18 = vor.u32 %v2172_v15, %v1951_v17  ;;  %v1910_v25 = vor.u32 %v2167_v22, %v1909_v21 }
 0x235   : > { %1109 = vmatmul.bf16.gmra.mxu2 %v2716_v23  ;;  %1158 = vmatmul.bf16.gmra.mxu3 %v2716_v23 }
 0x236   : > { %1207 = vmatmul.bf16.gmra.mxu0 %v2716_v23  ;;  %1256 = vmatmul.bf16.gmra.mxu1 %v2716_v23 }
 0x237   : > { %1445 = vmatpush.bf16.msra.mxu1 %v1954_v18  ;;  %1299 = vmatpush.bf16.msra.mxu2 %v1910_v25 }
 0x23a   : > { %v692_v30 = vpop.trf.xlu0 }
 0x23b   : > { %1446 = vmatpush.bf16.msra.mxu1 %v1922_v33 }
 0x242   : > { %v693_v37 = vpop.trf.xlu0 }
 0x243   : > { %v2722_v38 = vpack.c.bf16 %v693_v37, %v692_v30  ;;  %v1918_v30 = vor.u32 %v2168_v28, %v1917_v27 }
 0x245   : > { %1114 = vmatmul.bf16.gmra.mxu2 %v2722_v38  ;;  %1163 = vmatmul.bf16.gmra.mxu3 %v2722_v38 }
 0x246   : > { %1212 = vmatmul.bf16.gmra.mxu0 %v2722_v38  ;;  %1261 = vmatmul.bf16.gmra.mxu1 %v2722_v38 }
 0x247   : > { %1397 = vmatpush.bf16.msra.mxu0 %v1918_v30 }
 0x24a   : > { %v694_v45 = vpop.trf.xlu0 }
 0x252   : > { %v695_v52 = vpop.trf.xlu0 }
 0x253   : > { %v2728_v53 = vpack.c.bf16 %v695_v52, %v694_v45 }
 0x255   : > { %1119 = vmatmul.bf16.gmra.mxu2 %v2728_v53  ;;  %1168 = vmatmul.bf16.gmra.mxu3 %v2728_v53 }
 0x256   : > { %1217 = vmatmul.bf16.gmra.mxu0 %v2728_v53  ;;  %1266 = vmatmul.bf16.gmra.mxu1 %v2728_v53 }
 0x25a   : > { %v696_v60 = vpop.trf.xlu0 }
 0x262   : > { %v697_v3 = vpop.trf.xlu0 }
 0x263   : > { %v2734_v4 = vpack.c.bf16 %v697_v3, %v696_v60 }
 0x265   : > { %1124 = vmatmul.bf16.gmra.mxu2 %v2734_v4  ;;  %1173 = vmatmul.bf16.gmra.mxu3 %v2734_v4 }
 0x266   : > { %1222 = vmatmul.bf16.gmra.mxu0 %v2734_v4  ;;  %1271 = vmatmul.bf16.gmra.mxu1 %v2734_v4 }
 0x26a   : > { %v698_v12 = vpop.trf.xlu0 }
 0x272   : > { %v699_v19 = vpop.trf.xlu0 }
 0x273   : > { %v2740_v20 = vpack.c.bf16 %v699_v19, %v698_v12 }
 0x275   : > { %1129 = vmatmul.bf16.gmra.mxu2 %v2740_v20  ;;  %1178 = vmatmul.bf16.gmra.mxu3 %v2740_v20 }
 0x276   : > { %1227 = vmatmul.bf16.gmra.mxu0 %v2740_v20  ;;  %1276 = vmatmul.bf16.gmra.mxu1 %v2740_v20 }
 0x27a   : > { %v700_v34 = vpop.trf.xlu0 }
 0x282   : > { %v701_v35 = vpop.trf.xlu0 }
 0x283   : > { %v2746_v36 = vpack.c.bf16 %v701_v35, %v700_v34 }
 0x285   : > { %1134 = vmatmul.bf16.gmra.mxu2 %v2746_v36  ;;  %1183 = vmatmul.bf16.gmra.mxu3 %v2746_v36 }
 0x286   : > { %1232 = vmatmul.bf16.gmra.mxu0 %v2746_v36  ;;  %1281 = vmatmul.bf16.gmra.mxu1 %v2746_v36 }
 0x28a   : > { %v702_v37 = vpop.trf.xlu0 }
 0x292   : > { %v703_v39 = vpop.trf.xlu0 }
 0x293   : > { %v2752_v40 = vpack.c.bf16 %v703_v39, %v702_v37 }
 0x295   : > { %1139 = vmatmul.bf16.gmra.mxu2 %v2752_v40  ;;  %1188 = vmatmul.bf16.gmra.mxu3 %v2752_v40 }
 0x296   : > { %1237 = vmatmul.bf16.gmra.mxu0 %v2752_v40  ;;  %1286 = vmatmul.bf16.gmra.mxu1 %v2752_v40 }
 0x2a3   : > { %v1203_v41 = vpop.f32.mrf.mxu0  ;;  %v1252_v42 = vpop.f32.mrf.mxu1 }
 0x2a5   : > { %1300 = vmatmul.bf16.vlgmr.msra.gmra.mxu2 %v2710_v8  ;;  %1349 = vmatmul.bf16.vlgmr.msra.gmra.mxu3 %v2710_v8 }
 0x2a6   : > { %1398 = vmatmul.bf16.vlgmr.msra.gmra.mxu0 %v2710_v8  ;;  %1447 = vmatmul.bf16.vlgmr.msra.gmra.mxu1 %v2710_v8 }
 0x2a8   : > { %v1105_v43 = vpop.f32.mrf.mxu2  ;;  %v1154_v44 = vpop.f32.mrf.mxu3 }
 0x2ab   : > { %v1205_v45 = vpop.f32.mrf.mxu0  ;;  %v1254_v46 = vpop.f32.mrf.mxu1 }
 0x2ac   : > { %v1530_v47 = vmax.f32 %v1203_v41, %v1205_v45  ;;  %v1551_v48 = vmax.f32 %v1252_v42, %v1254_v46 }
 0x2b0   : > { %v1107_v49 = vpop.f32.mrf.mxu2  ;;  %v1156_v50 = vpop.f32.mrf.mxu3 }
 0x2b1   : > { %v1488_v51 = vmax.f32 %v1105_v43, %v1107_v49  ;;  %v1509_v52 = vmax.f32 %v1154_v44, %v1156_v50 }
 0x2b3   : > { %v1208_v54 = vpop.f32.mrf.mxu0  ;;  %v1257_v55 = vpop.f32.mrf.mxu1 }
 0x2b4   : > { %v1531_v56 = vmax.f32 %v1530_v47, %v1208_v54  ;;  %v1552_v57 = vmax.f32 %v1551_v48, %v1257_v55 }
 0x2b5   : > { %1305 = vmatmul.bf16.gmra.mxu2 %v2716_v23  ;;  %1354 = vmatmul.bf16.gmra.mxu3 %v2716_v23 }
 0x2b6   : > { %1403 = vmatmul.bf16.gmra.mxu0 %v2716_v23  ;;  %1452 = vmatmul.bf16.gmra.mxu1 %v2716_v23 }
 0x2b8   : > { %v1110_v8 = vpop.f32.mrf.mxu2  ;;  %v1159_v58 = vpop.f32.mrf.mxu3 }
 0x2b9   : > { %v1489_v59 = vmax.f32 %v1488_v51, %v1110_v8  ;;  %v1510_v60 = vmax.f32 %v1509_v52, %v1159_v58 }
 0x2bb   : > { %v1210_v61 = vpop.f32.mrf.mxu0  ;;  %v1259_v62 = vpop.f32.mrf.mxu1 }
 0x2bc   : > { %v1532_v63 = vmax.f32 %v1531_v56, %v1210_v61  ;;  %v1553_v0 = vmax.f32 %v1552_v57, %v1259_v62 }
 0x2c0   : > { %v1112_v1 = vpop.f32.mrf.mxu2  ;;  %v1161_v2 = vpop.f32.mrf.mxu3 }
 0x2c1   : > { %v1490_v3 = vmax.f32 %v1489_v59, %v1112_v1  ;;  %v1511_v5 = vmax.f32 %v1510_v60, %v1161_v2 }
 0x2c3   : > { %v1213_v6 = vpop.f32.mrf.mxu0  ;;  %v1262_v7 = vpop.f32.mrf.mxu1 }
 0x2c4   : > { %v1533_v9 = vmax.f32 %v1532_v63, %v1213_v6  ;;  %v1554_v10 = vmax.f32 %v1553_v0, %v1262_v7 }
 0x2c5   : > { %1310 = vmatmul.bf16.gmra.mxu2 %v2722_v38  ;;  %1359 = vmatmul.bf16.gmra.mxu3 %v2722_v38 }
 0x2c6   : > { %1408 = vmatmul.bf16.gmra.mxu0 %v2722_v38  ;;  %1457 = vmatmul.bf16.gmra.mxu1 %v2722_v38 }
 0x2c8   : > { %v1115_v23 = vpop.f32.mrf.mxu2  ;;  %v1164_v11 = vpop.f32.mrf.mxu3 }
 0x2c9   : > { %v1491_v12 = vmax.f32 %v1490_v3, %v1115_v23  ;;  %v1512_v13 = vmax.f32 %v1511_v5, %v1164_v11 }
 0x2cb   : > { %v1215_v14 = vpop.f32.mrf.mxu0  ;;  %v1264_v15 = vpop.f32.mrf.mxu1 }
 0x2cc   : > { %v1534_v16 = vmax.f32 %v1533_v9, %v1215_v14  ;;  %v1555_v17 = vmax.f32 %v1554_v10, %v1264_v15 }
 0x2d0   : > { %v1117_v18 = vpop.f32.mrf.mxu2  ;;  %v1166_v19 = vpop.f32.mrf.mxu3 }
 0x2d1   : > { %v1492_v21 = vmax.f32 %v1491_v12, %v1117_v18  ;;  %v1513_v22 = vmax.f32 %v1512_v13, %v1166_v19 }
 0x2d3   : > { %v1218_v24 = vpop.f32.mrf.mxu0  ;;  %v1267_v25 = vpop.f32.mrf.mxu1 }
 0x2d4   : > { %v1535_v26 = vmax.f32 %v1534_v16, %v1218_v24  ;;  %v1556_v27 = vmax.f32 %v1555_v17, %v1267_v25 }
 0x2d5   : > { %1315 = vmatmul.bf16.gmra.mxu2 %v2728_v53  ;;  %1364 = vmatmul.bf16.gmra.mxu3 %v2728_v53 }
 0x2d6   : > { %1413 = vmatmul.bf16.gmra.mxu0 %v2728_v53  ;;  %1462 = vmatmul.bf16.gmra.mxu1 %v2728_v53 }
 0x2d8   : > { %v1120_v38 = vpop.f32.mrf.mxu2  ;;  %v1169_v28 = vpop.f32.mrf.mxu3 }
 0x2d9   : > { %v1493_v29 = vmax.f32 %v1492_v21, %v1120_v38  ;;  %v1514_v30 = vmax.f32 %v1513_v22, %v1169_v28 }
 0x2db   : > { %v1220_v31 = vpop.f32.mrf.mxu0  ;;  %v1269_v32 = vpop.f32.mrf.mxu1 }
 0x2dc   : > { %v1536_v33 = vmax.f32 %v1535_v26, %v1220_v31  ;;  %v1557_v34 = vmax.f32 %v1556_v27, %v1269_v32 }
 0x2e0   : > { %v1122_v35 = vpop.f32.mrf.mxu2  ;;  %v1171_v37 = vpop.f32.mrf.mxu3 }
 0x2e1   : > { %v1494_v39 = vmax.f32 %v1493_v29, %v1122_v35  ;;  %v1515_v41 = vmax.f32 %v1514_v30, %v1171_v37 }
 0x2e3   : > { %v1223_v42 = vpop.f32.mrf.mxu0  ;;  %v1272_v43 = vpop.f32.mrf.mxu1 }
 0x2e4   : > { %v1537_v44 = vmax.f32 %v1536_v33, %v1223_v42  ;;  %v1558_v45 = vmax.f32 %v1557_v34, %v1272_v43 }
 0x2e5   : > { %1320 = vmatmul.bf16.gmra.mxu2 %v2734_v4  ;;  %1369 = vmatmul.bf16.gmra.mxu3 %v2734_v4 }
 0x2e6   : > { %1418 = vmatmul.bf16.gmra.mxu0 %v2734_v4  ;;  %1467 = vmatmul.bf16.gmra.mxu1 %v2734_v4 }
 0x2e8   : > { %v1125_v53 = vpop.f32.mrf.mxu2  ;;  %v1174_v46 = vpop.f32.mrf.mxu3 }
 0x2e9   : > { %v1495_v47 = vmax.f32 %v1494_v39, %v1125_v53  ;;  %v1516_v48 = vmax.f32 %v1515_v41, %v1174_v46 }
 0x2eb   : > { %v1225_v49 = vpop.f32.mrf.mxu0  ;;  %v1274_v50 = vpop.f32.mrf.mxu1 }
 0x2ec   : > { %v1538_v51 = vmax.f32 %v1537_v44, %v1225_v49  ;;  %v1559_v52 = vmax.f32 %v1558_v45, %v1274_v50 }
 0x2f0   : > { %v1127_v54 = vpop.f32.mrf.mxu2  ;;  %v1176_v55 = vpop.f32.mrf.mxu3 }
 0x2f1   : > { %v1496_v56 = vmax.f32 %v1495_v47, %v1127_v54  ;;  %v1517_v57 = vmax.f32 %v1516_v48, %v1176_v55 }
 0x2f3   : > { %v1228_v8 = vpop.f32.mrf.mxu0  ;;  %v1277_v58 = vpop.f32.mrf.mxu1 }
 0x2f4   : > { %v1539_v59 = vmax.f32 %v1538_v51, %v1228_v8  ;;  %v1560_v60 = vmax.f32 %v1559_v52, %v1277_v58 }
 0x2f5   : > { %1325 = vmatmul.bf16.gmra.mxu2 %v2740_v20  ;;  %1374 = vmatmul.bf16.gmra.mxu3 %v2740_v20 }
 0x2f6   : > { %1423 = vmatmul.bf16.gmra.mxu0 %v2740_v20  ;;  %1472 = vmatmul.bf16.gmra.mxu1 %v2740_v20 }
 0x2f8   : > { %v1130_v4 = vpop.f32.mrf.mxu2  ;;  %v1179_v61 = vpop.f32.mrf.mxu3 }
 0x2f9   : > { %v1497_v62 = vmax.f32 %v1496_v56, %v1130_v4  ;;  %v1518_v63 = vmax.f32 %v1517_v57, %v1179_v61 }
 0x2fb   : > { %v1230_v0 = vpop.f32.mrf.mxu0  ;;  %v1279_v1 = vpop.f32.mrf.mxu1 }
 0x2fc   : > { %v1540_v2 = vmax.f32 %v1539_v59, %v1230_v0  ;;  %v1561_v3 = vmax.f32 %v1560_v60, %v1279_v1 }
 0x300   : > { %v1132_v5 = vpop.f32.mrf.mxu2  ;;  %v1181_v6 = vpop.f32.mrf.mxu3 }
 0x301   : > { %v1498_v7 = vmax.f32 %v1497_v62, %v1132_v5  ;;  %v1519_v9 = vmax.f32 %v1518_v63, %v1181_v6 }
 0x303   : > { %v1233_v10 = vpop.f32.mrf.mxu0  ;;  %v1282_v23 = vpop.f32.mrf.mxu1 }
 0x304   : > { %v1541_v11 = vmax.f32 %v1540_v2, %v1233_v10  ;;  %v1562_v12 = vmax.f32 %v1561_v3, %v1282_v23 }
 0x305   : > { %1330 = vmatmul.bf16.gmra.mxu2 %v2746_v36  ;;  %1379 = vmatmul.bf16.gmra.mxu3 %v2746_v36 }
 0x306   : > { %1428 = vmatmul.bf16.gmra.mxu0 %v2746_v36  ;;  %1477 = vmatmul.bf16.gmra.mxu1 %v2746_v36 }
 0x308   : > { %v1135_v20 = vpop.f32.mrf.mxu2  ;;  %v1184_v13 = vpop.f32.mrf.mxu3 }
 0x309   : > { %v1499_v14 = vmax.f32 %v1498_v7, %v1135_v20  ;;  %v1520_v15 = vmax.f32 %v1519_v9, %v1184_v13 }
 0x30b   : > { %v1235_v16 = vpop.f32.mrf.mxu0  ;;  %v1284_v17 = vpop.f32.mrf.mxu1 }
 0x30c   : > { %v1542_v18 = vmax.f32 %v1541_v11, %v1235_v16  ;;  %v1563_v19 = vmax.f32 %v1562_v12, %v1284_v17 }
 0x310   : > { %v1137_v21 = vpop.f32.mrf.mxu2  ;;  %v1186_v22 = vpop.f32.mrf.mxu3 }
 0x311   : > { %v1500_v24 = vmax.f32 %v1499_v14, %v1137_v21  ;;  %v1521_v25 = vmax.f32 %v1520_v15, %v1186_v22 }
 0x313   : > { %v1238_v26 = vpop.f32.mrf.mxu0  ;;  %v1287_v27 = vpop.f32.mrf.mxu1 }
 0x314   : > { %v1543_v38 = vmax.f32 %v1542_v18, %v1238_v26  ;;  %v1564_v28 = vmax.f32 %v1563_v19, %v1287_v27 }
 0x315   : > { %1335 = vmatmul.bf16.gmra.mxu2 %v2752_v40  ;;  %1384 = vmatmul.bf16.gmra.mxu3 %v2752_v40 }
 0x316   : > { %1433 = vmatmul.bf16.gmra.mxu0 %v2752_v40  ;;  %1482 = vmatmul.bf16.gmra.mxu1 %v2752_v40 }
 0x318   : > { %v1140_v36 = vpop.f32.mrf.mxu2  ;;  %v1189_v29 = vpop.f32.mrf.mxu3 }
 0x319   : > { %v1501_v30 = vmax.f32 %v1500_v24, %v1140_v36  ;;  %v1522_v31 = vmax.f32 %v1521_v25, %v1189_v29 }
 0x31b   : > { %v1240_v32 = vpop.f32.mrf.mxu0  ;;  %v1289_v33 = vpop.f32.mrf.mxu1 }
 0x31c   : > { %v1544_v34 = vmax.f32 %v1543_v38, %v1240_v32  ;;  %v1565_v35 = vmax.f32 %v1564_v28, %v1289_v33 }
 0x31e   : > { %v1545_v37 = vrot.slane %v1544_v34, 4  ;;  %v1566_v39 = vrot.slane %v1565_v35, 4 }
 0x320   : > { %v1546_v41 = vmax.f32 %v1544_v34, %v1545_v37  ;;  %v1567_v42 = vmax.f32 %v1565_v35, %v1566_v39  ;;  %v1142_v43 = vpop.f32.mrf.mxu2  ;;  %v1191_v44 = vpop.f32.mrf.mxu3 }
 0x321   : > { %v1502_v45 = vmax.f32 %v1501_v30, %v1142_v43  ;;  %v1523_v53 = vmax.f32 %v1522_v31, %v1191_v44 }
 0x322   : > { %v1547_v46 = vrot.slane %v1546_v41, 2  ;;  %v1568_v47 = vrot.slane %v1567_v42, 2 }
 0x323   : > { %v1503_v48 = vrot.slane %v1502_v45, 4  ;;  %v1524_v40 = vrot.slane %v1523_v53, 4  ;;  %v1399_v49 = vpop.f32.mrf.mxu0  ;;  %v1448_v50 = vpop.f32.mrf.mxu1 }
 0x324   : > { %v1548_v51 = vmax.f32 %v1546_v41, %v1547_v46  ;;  %v1569_v52 = vmax.f32 %v1567_v42, %v1568_v47 }
 0x325   : > { %v1504_v54 = vmax.f32 %v1502_v45, %v1503_v48  ;;  %v1525_v55 = vmax.f32 %v1523_v53, %v1524_v40 }
 0x326   : > { %v1549_v56 = vrot.slane %v1548_v51, 1  ;;  %v1570_v57 = vrot.slane %v1569_v52, 1 }
 0x327   : > { %v1505_v8 = vrot.slane %v1504_v54, 2  ;;  %v1526_v58 = vrot.slane %v1525_v55, 2 }
 0x328   : > { %v2790_v59 = vmax.f32 %v1548_v51, %v1549_v56  ;;  %v2792_v60 = vmax.f32 %v1569_v52, %v1570_v57  ;;  %v1301_v4 = vpop.f32.mrf.mxu2  ;;  %v1350_v61 = vpop.f32.mrf.mxu3 }
 0x329   : > { %v1506_v62 = vmax.f32 %v1504_v54, %v1505_v8  ;;  %v1527_v63 = vmax.f32 %v1525_v55, %v1526_v58 }
 0x32b   : > { %v1507_v0 = vrot.slane %v1506_v62, 1  ;;  %v1528_v1 = vrot.slane %v1527_v63, 1  ;;  %v1401_v2 = vpop.f32.mrf.mxu0  ;;  %v1450_v3 = vpop.f32.mrf.mxu1 }
 0x32c   : > { %v1614_v5 = vmax.f32 %v1399_v49, %v1401_v2  ;;  %v1635_v6 = vmax.f32 %v1448_v50, %v1450_v3 }
 0x32d   : > { %v2794_v7 = vmax.f32 %v1506_v62, %v1507_v0  ;;  %v2796_v9 = vmax.f32 %v1527_v63, %v1528_v1 }
 0x330   : > { %v1303_v10 = vpop.f32.mrf.mxu2  ;;  %v1352_v23 = vpop.f32.mrf.mxu3 }
 0x331   : > { %v1572_v11 = vmax.f32 %v1301_v4, %v1303_v10  ;;  %v1593_v12 = vmax.f32 %v1350_v61, %v1352_v23 }
 0x333   : > { %v1404_v20 = vpop.f32.mrf.mxu0  ;;  %v1453_v13 = vpop.f32.mrf.mxu1 }
 0x334   : > { %v1615_v14 = vmax.f32 %v1614_v5, %v1404_v20  ;;  %v1636_v15 = vmax.f32 %v1635_v6, %v1453_v13 }
 0x338   : > { %v1306_v16 = vpop.f32.mrf.mxu2  ;;  %v1355_v17 = vpop.f32.mrf.mxu3 }
 0x339   : > { %v1573_v18 = vmax.f32 %v1572_v11, %v1306_v16  ;;  %v1594_v19 = vmax.f32 %v1593_v12, %v1355_v17 }
 0x33b   : > { %v1406_v21 = vpop.f32.mrf.mxu0  ;;  %v1455_v22 = vpop.f32.mrf.mxu1 }
 0x33c   : > { %v1616_v24 = vmax.f32 %v1615_v14, %v1406_v21  ;;  %v1637_v25 = vmax.f32 %v1636_v15, %v1455_v22 }
 0x340   : > { %v1308_v26 = vpop.f32.mrf.mxu2  ;;  %v1357_v27 = vpop.f32.mrf.mxu3 }
 0x341   : > { %v1574_v38 = vmax.f32 %v1573_v18, %v1308_v26  ;;  %v1595_v28 = vmax.f32 %v1594_v19, %v1357_v27 }
 0x343   : > { %v1409_v36 = vpop.f32.mrf.mxu0  ;;  %v1458_v29 = vpop.f32.mrf.mxu1 }
 0x344   : > { %v1617_v30 = vmax.f32 %v1616_v24, %v1409_v36  ;;  %v1638_v31 = vmax.f32 %v1637_v25, %v1458_v29 }
 0x348   : > { %v1311_v32 = vpop.f32.mrf.mxu2  ;;  %v1360_v33 = vpop.f32.mrf.mxu3 }
 0x349   : > { %v1575_v34 = vmax.f32 %v1574_v38, %v1311_v32  ;;  %v1596_v35 = vmax.f32 %v1595_v28, %v1360_v33 }
 0x34b   : > { %v1411_v37 = vpop.f32.mrf.mxu0  ;;  %v1460_v39 = vpop.f32.mrf.mxu1 }
 0x34c   : > { %v1618_v5 = vmax.f32 %v1617_v30, %v1411_v37  ;;  %v1639_v6 = vmax.f32 %v1638_v31, %v1460_v39 }
 0x350   : > { %v1313_v41 = vpop.f32.mrf.mxu2  ;;  %v1362_v42 = vpop.f32.mrf.mxu3 }
 0x351   : > { %v1576_v16 = vmax.f32 %v1575_v34, %v1313_v41  ;;  %v1597_v17 = vmax.f32 %v1596_v35, %v1362_v42 }
 0x353   : > { %v1414_v43 = vpop.f32.mrf.mxu0  ;;  %v1463_v44 = vpop.f32.mrf.mxu1 }
 0x354   : > { %v1619_v11 = vmax.f32 %v1618_v5, %v1414_v43  ;;  %v1640_v12 = vmax.f32 %v1639_v6, %v1463_v44 }
 0x358   : > { %v1316_v45 = vpop.f32.mrf.mxu2  ;;  %v1365_v53 = vpop.f32.mrf.mxu3 }
 0x359   : > { %v1577_v21 = vmax.f32 %v1576_v16, %v1316_v45  ;;  %v1598_v22 = vmax.f32 %v1597_v17, %v1365_v53 }
 0x35b   : > { %v1416_v46 = vpop.f32.mrf.mxu0  ;;  %v1465_v47 = vpop.f32.mrf.mxu1 }
 0x35c   : > { %v1620_v14 = vmax.f32 %v1619_v11, %v1416_v46  ;;  %v1641_v15 = vmax.f32 %v1640_v12, %v1465_v47 }
 0x360   : > { %v1318_v48 = vpop.f32.mrf.mxu2  ;;  %v1367_v40 = vpop.f32.mrf.mxu3 }
 0x361   : > { %v1578_v38 = vmax.f32 %v1577_v21, %v1318_v48  ;;  %v1599_v28 = vmax.f32 %v1598_v22, %v1367_v40 }
 0x363   : > { %v1419_v49 = vpop.f32.mrf.mxu0  ;;  %v1468_v50 = vpop.f32.mrf.mxu1 }
 0x364   : > { %v1621_v18 = vmax.f32 %v1620_v14, %v1419_v49  ;;  %v1642_v19 = vmax.f32 %v1641_v15, %v1468_v50 }
 0x368   : > { %v1321_v51 = vpop.f32.mrf.mxu2  ;;  %v1370_v52 = vpop.f32.mrf.mxu3 }
 0x369   : > { %v1579_v30 = vmax.f32 %v1578_v38, %v1321_v51  ;;  %v1600_v31 = vmax.f32 %v1599_v28, %v1370_v52 }
 0x36b   : > { %v1421_v54 = vpop.f32.mrf.mxu0  ;;  %v1470_v55 = vpop.f32.mrf.mxu1 }
 0x36c   : > { %v1622_v24 = vmax.f32 %v1621_v18, %v1421_v54  ;;  %v1643_v25 = vmax.f32 %v1642_v19, %v1470_v55 }
 0x370   : > { %v1323_v56 = vpop.f32.mrf.mxu2  ;;  %v1372_v57 = vpop.f32.mrf.mxu3 }
 0x371   : > { %v1580_v34 = vmax.f32 %v1579_v30, %v1323_v56  ;;  %v1601_v35 = vmax.f32 %v1600_v31, %v1372_v57 }
 0x373   : > { %v1424_v8 = vpop.f32.mrf.mxu0  ;;  %v1473_v58 = vpop.f32.mrf.mxu1 }
 0x374   : > { %v1623_v36 = vmax.f32 %v1622_v24, %v1424_v8  ;;  %v1644_v29 = vmax.f32 %v1643_v25, %v1473_v58 }
 0x378   : > { %v1326_v4 = vpop.f32.mrf.mxu2  ;;  %v1375_v61 = vpop.f32.mrf.mxu3 }
 0x379   : > { %v1581_v43 = vmax.f32 %v1580_v34, %v1326_v4  ;;  %v1602_v44 = vmax.f32 %v1601_v35, %v1375_v61 }
 0x37b   : > { %v1426_v62 = vpop.f32.mrf.mxu0  ;;  %v1475_v63 = vpop.f32.mrf.mxu1 }
 0x37c   : > { %v1624_v37 = vmax.f32 %v1623_v36, %v1426_v62  ;;  %v1645_v39 = vmax.f32 %v1644_v29, %v1475_v63 }
 0x380   : > { %v1328_v0 = vpop.f32.mrf.mxu2  ;;  %v1377_v1 = vpop.f32.mrf.mxu3 }
 0x381   : > { %v1582_v48 = vmax.f32 %v1581_v43, %v1328_v0  ;;  %v1603_v40 = vmax.f32 %v1602_v44, %v1377_v1 }
 0x383   : > { %v1429_v2 = vpop.f32.mrf.mxu0  ;;  %v1478_v3 = vpop.f32.mrf.mxu1 }
 0x384   : > { %v1625_v41 = vmax.f32 %v1624_v37, %v1429_v2  ;;  %v1646_v42 = vmax.f32 %v1645_v39, %v1478_v3 }
 0x388   : > { %v1331_v10 = vpop.f32.mrf.mxu2  ;;  %v1380_v23 = vpop.f32.mrf.mxu3 }
 0x389   : > { %v1583_v51 = vmax.f32 %v1582_v48, %v1331_v10  ;;  %v1604_v52 = vmax.f32 %v1603_v40, %v1380_v23 }
 0x38b   : > { %v1431_v20 = vpop.f32.mrf.mxu0  ;;  %v1480_v13 = vpop.f32.mrf.mxu1 }
 0x38c   : > { %v1626_v45 = vmax.f32 %v1625_v41, %v1431_v20  ;;  %v1647_v53 = vmax.f32 %v1646_v42, %v1480_v13 }
 0x390   : > { %v1333_v26 = vpop.f32.mrf.mxu2  ;;  %v1382_v27 = vpop.f32.mrf.mxu3 }
 0x391   : > { %v1584_v56 = vmax.f32 %v1583_v51, %v1333_v26  ;;  %v1605_v57 = vmax.f32 %v1604_v52, %v1382_v27 }
 0x393   : > { %v1434_v32 = vpop.f32.mrf.mxu0  ;;  %v1483_v33 = vpop.f32.mrf.mxu1 }
 0x394   : > { %v1627_v49 = vmax.f32 %v1626_v45, %v1434_v32  ;;  %v1648_v50 = vmax.f32 %v1647_v53, %v1483_v33 }
 0x398   : > { %v1336_v46 = vpop.f32.mrf.mxu2  ;;  %v1385_v47 = vpop.f32.mrf.mxu3 }
 0x399   : > { %v1585_v4 = vmax.f32 %v1584_v56, %v1336_v46  ;;  %v1606_v61 = vmax.f32 %v1605_v57, %v1385_v47 }
 0x39b   : > { %v1436_v54 = vpop.f32.mrf.mxu0  ;;  %v1485_v55 = vpop.f32.mrf.mxu1 }
 0x39c   : > { %v1628_v8 = vmax.f32 %v1627_v49, %v1436_v54  ;;  %v1649_v58 = vmax.f32 %v1648_v50, %v1485_v55 }
 0x39e   : > { %v1629_v62 = vrot.slane %v1628_v8, 4  ;;  %v1650_v63 = vrot.slane %v1649_v58, 4 }
 0x3a0   : > { %v1630_v2 = vmax.f32 %v1628_v8, %v1629_v62  ;;  %v1651_v3 = vmax.f32 %v1649_v58, %v1650_v63  ;;  %v1338_v5 = vpop.f32.mrf.mxu2  ;;  %v1387_v6 = vpop.f32.mrf.mxu3 }
 0x3a1   : > { %v1586_v0 = vmax.f32 %v1585_v4, %v1338_v5  ;;  %v1607_v1 = vmax.f32 %v1606_v61, %v1387_v6 }
 0x3a2   : > { %v1631_v11 = vrot.slane %v1630_v2, 2  ;;  %v1652_v12 = vrot.slane %v1651_v3, 2 }
 0x3a3   : > { %v1587_v10 = vrot.slane %v1586_v0, 4  ;;  %v1608_v23 = vrot.slane %v1607_v1, 4 }
 0x3a4   : > { %v1632_v20 = vmax.f32 %v1630_v2, %v1631_v11  ;;  %v1653_v13 = vmax.f32 %v1651_v3, %v1652_v12 }
 0x3a5   : > { %v1588_v14 = vmax.f32 %v1586_v0, %v1587_v10  ;;  %v1609_v15 = vmax.f32 %v1607_v1, %v1608_v23 }
 0x3a6   : > { %v1633_v16 = vrot.slane %v1632_v20, 1  ;;  %v1654_v17 = vrot.slane %v1653_v13, 1 }
 0x3a7   : > { %v1589_v18 = vrot.slane %v1588_v14, 2  ;;  %v1610_v19 = vrot.slane %v1609_v15, 2 }
 0x3a8   : > { %v1634_v21 = vmax.f32 %v1632_v20, %v1633_v16  ;;  %v1655_v22 = vmax.f32 %v1653_v13, %v1654_v17 }
 0x3a9   : > { %v1590_v24 = vmax.f32 %v1588_v14, %v1589_v18  ;;  %v1611_v25 = vmax.f32 %v1609_v15, %v1610_v19  ;;  %1659 = sbr.rel (%p2147_p4) target bundleno = 950 (0x3b6), region = 52 }
 0x3ab   : > { %v1591_v26 = vrot.slane %v1590_v24, 1  ;;  %v1612_v27 = vrot.slane %v1611_v25, 1 }
 0x3ad   : > { %v1592_v38 = vmax.f32 %v1590_v24, %v1591_v26  ;;  %v1613_v28 = vmax.f32 %v1611_v25, %v1612_v27 }
 0x3ae   : > { %v1668_v36 = vrot.slane %v2796_v9, 7  ;;  %v1669_v29 = vrot.slane %v2790_v59, 6  ;;  %v1670_v30 = vrot.slane %v2792_v60, 5  ;;  %v1673_v33 = vrot.slane %v1634_v21, 2 }
 0x3af   : > { %v1671_v31 = vrot.slane %v1592_v38, 4  ;;  %v1672_v32 = vrot.slane %v1613_v28, 3  ;;  %v1674_v37 = vrot.slane %v1655_v22, 1  ;;  %vm1675_vm3 = vcmask 1040384  }
 0x3b0   : > { %v1676_v39 = vsel %vm1675_vm3, %v2794_v7, %v1668_v36  ;;  %vm1677_vm4 = vcmask 1042434   ;;  %vm1679_vm5 = vcmask 1041408   ;;  %vm1681_vm6 = vcmask 1044484  }
 0x3b1   : > { %v1678_v34 = vsel %vm1677_vm4, %v1669_v29, %v1670_v30  ;;  %v1682_v35 = vsel %vm1681_vm6, %v1671_v31, %v1672_v32  ;;  %vm1683_vm7 = vcmask 1046534   ;;  %vm1685_vm8 = vcmask 1045508  }
 0x3b2   : > { %v1680_v41 = vsel %vm1679_vm5, %v1676_v39, %v1678_v34  ;;  %v1684_v42 = vsel %vm1683_vm7, %v1673_v33, %v1674_v37  ;;  %vm1687_vm9 = vcmask 1043456  }
 0x3b3   : > { %v1686_v43 = vsel %vm1685_vm8, %v1682_v35, %v1684_v42 }
 0x3b4   : > { %v1688_v44 = vsel %vm1687_vm9, %v1680_v41, %v1686_v43 }
 0x3b5   : > { %1690 = vst [vmem:[%s2799_s5] sm:$0xff] %v1688_v44 }
 0x3b6 PF: > { %p2148_p5 = scmp.le.s32.totalorder %s2433_s24, 0 }
 0x3b8   : > { %1694 = sbr.rel (%p2148_p5) target bundleno = 967 (0x3c7), region = 56 }
 0x3bd   : > { %v1704_v45 = vrot.slane %v2796_v9, 7  ;;  %v1705_v53 = vrot.slane %v2790_v59, 6  ;;  %v1706_v46 = vrot.slane %v2792_v60, 5  ;;  %v1707_v47 = vrot.slane %v1592_v38, 4  ;;  %v1695_v9 = vld [vmem:[%s2799_s5] sm:$0xff] }
 0x3be   : > { %v1708_v48 = vrot.slane %v1613_v28, 3  ;;  %v1709_v40 = vrot.slane %v1634_v21, 2  ;;  %v1710_v49 = vrot.slane %v1655_v22, 1  ;;  %vm1711_vm10 = vcmask 1040384  }
 0x3bf   : > { %v1712_v50 = vsel %vm1711_vm10, %v2794_v7, %v1704_v45  ;;  %vm1713_vm11 = vcmask 1042434   ;;  %vm1715_vm12 = vcmask 1041408   ;;  %vm1717_vm13 = vcmask 1044484  }
 0x3c0   : > { %v1714_v51 = vsel %vm1713_vm11, %v1705_v53, %v1706_v46  ;;  %v1718_v52 = vsel %vm1717_vm13, %v1707_v47, %v1708_v48  ;;  %vm1719_vm14 = vcmask 1046534   ;;  %vm1721_vm15 = vcmask 1045508  }
 0x3c1   : > { %v1716_v54 = vsel %vm1715_vm12, %v1712_v50, %v1714_v51  ;;  %v1720_v59 = vsel %vm1719_vm14, %v1709_v40, %v1710_v49  ;;  %vm1723_vm0 = vcmask 1043456  }
 0x3c2   : > { %v1722_v60 = vsel %vm1721_vm15, %v1718_v52, %v1720_v59 }
 0x3c3   : > { %v1724_v55 = vsel %vm1723_vm0, %v1716_v54, %v1722_v60 }
 0x3c4   : > { %v1726_v8 = vmax.f32 %v1695_v9, %v1724_v55 }
 0x3c6   : > { %1727 = vst [vmem:[%s2799_s5] sm:$0xff] %v1726_v8 }
 0x3c7 PF: > { %s2150_s24 = sshll.u32 %s2437_s25, 3  ;;  %s1741_s7 = sshll.u32 %s2799_s5, 4  ;;  %s1742_s7 = int_to_ptr.vmem [resolvable:$true] %s1741_s7 }
 0x3c8   : > { %s1739_s27 = scalar_lea.hbm %s2865_s6, %s2150_s24  ;;  %s2877_s16 = sand.u32 1, %s2425_s22  }
 0x3c9   : > { %s1743_s8 = sshll.u32 %s1739_s27, 4  ;;  %s1729_s18 = scalar_lea.sflag [#allocation4], %s2877_s16  ;;  %s1744_s8 = int_to_ptr.hbm [resolvable:$true] %s1743_s8 }
 0x3ca   : > { %s2365_s19 = sshra.s32 %s1744_s8, 4  ;;  %s2371_s25 = scalar_lea.hbm %s2865_s6, 16  ;;  %s2366_s19 = int_to_ptr.hbm [resolvable:$true] %s2365_s19 }
 0x3cb   : > { %s2367_s20 = scalar_lea.hbm %s2366_s19, 8  ;;  %p2372_p10 = scmp.lt.s32.totalorder %s2366_s19, %s2865_s6 }
 0x3cc   : > { %p2368_p6 = scmp.ne.s32.totalorder %s2366_s19, %s2367_s20  ;;  %p2373_p11 = scmp.lt.s32.totalorder %s2371_s25, %s2367_s20 }
 0x3ce   : > { %p2369_p7 = pnand %p2368_p6, %p2540_p3  ;;  %p2374_p12 = por %p2373_p11, %p2372_p10 }
 0x3d0   : > { %p2370_p8 = pneg %p2369_p7 }
 0x3d2   : > { %p2375_p13 = pnand %p2374_p12, %p2370_p8 }
 0x3d4   : > { %2378 = shalt.err (!%p2375_p13)
}
 0x3d5   : > { %2237 = dma.vmem_to_hbm [thread:$0]  (%p2540_p3), %s1742_s7, 128, %s1744_s8, %s1729_s18  }
 0x3d6 PF: > { %p2249_p0 = scmp.ge.s32.totalorder %s2449_s28, 2  ;;  %s1755_s15 = sand.u32 1, %s2421_s21  }
 0x3d7   : > { %s1756_s5 = scalar_lea.sflag [#allocation4], %s1755_s15 }
 0x3d8   : > { %p2244_p1 = pnand %p2249_p0, %p2550_p9 }
 0x3da   : > { %p2245_p2 = pneg %p2244_p1 }
 0x3dc   : > { %2416 = dma.done.wait (%p2245_p2), %s1756_s5, 128  }
 0x3dd   : > { %2418 = vsyncadd (%p2245_p2), %s1756_s5, 4294967168  ;;  %s20_s28 = sadd.s32 1, %s2449_s28   ;;  %s2878_s25 = sld [smem:[#allocation8_spill]] }
 0x3de   : > { %p17_p4 = scmp.ge.s32.totalorder %s20_s28, 6   ;;  %s2879_s10 = sld [smem:[#allocation9_spill]] }
 0x3df   : > { %s2880_s27 = sld [smem:[#allocation10_spill]]  ;;  %s2881_s21 = smov %s2425_s22 }
 0x3e0   : > { %s2882_s22 = smov %s2429_s23  ;;  %s2883_s23 = smov %s2566_s17 }
 0x3e1   : > { %s2884_s24 = smov %s2441_s26  ;;  %19 = sbr.rel (!%p17_p4) target bundleno = 8 (0x8), region = 92 }
 0x3e4   : > { %s2885_s26 = smov %s2879_s10 }
 0x3e6   :  { %1762 = vsyncpa [#allocation3], 1 }
 0x3e7   :  { %1764 = vsyncpa [#allocation3 + $0x1], 1 }
 0x3e8   :  { %1765 = vsyncpa [#allocation4], 1 }
 0x3e9   :  { %1767 = vsyncpa [#allocation4 + $0x1], 1 }

</bundles_post_ra>
